<compile_context>
chip_gen: v6e
topology: v6e:2x2x1
jax: 0.10.0
libtpu: 0.0.40
codegen_flags: <defaults>
</compile_context>

<pallas_src>
import functools

import jax
import jax.numpy as jnp
from jax import lax
from jax.experimental import pallas as pl
from jax.experimental.pallas import tpu as pltpu


def _bottleneck_kernel(x_ref, w1_ref, w2_ref, w3s_ref, *rest, emit_pre):
    """One image per grid step. x_ref: (1, H*W, Cin) in compute dtype.

    w1_ref : (Cin, planes)              -- conv1 (1x1)
    w2_ref : (9*planes, planes)         -- conv2 (3x3) in im2col form
    w3s_ref: (planes+Cin, 4*planes)     -- [conv3 ; shortcut] stacked (fused matmul)
    """
    if emit_pre:
        out_ref, pre_ref, patch_ref, lhs_ref = rest
    else:
        out_ref, patch_ref, lhs_ref = rest
        pre_ref = None

    H, W, _ = patch_ref.shape
    planes = w1_ref.shape[1]
    Cin = x_ref.shape[2]
    cdt = w1_ref.dtype                      # compute dtype for the MXU (f32 or bf16)

    x = x_ref[0]                            # (H*W, Cin)

    # ---- conv1: 1x1 conv == channel matmul, then ReLU (f32 accumulate) ----------
    h1 = jnp.dot(x, w1_ref[...], preferred_element_type=jnp.float32)
    h1 = jnp.maximum(h1, 0.0)               # (H*W, planes) f32
    h1_img = h1.reshape(H, W, planes)

    # ---- conv2: 3x3, pad=1, stride=1 as a single im2col matmul ------------------
    # Scatter the 9 shifted taps into one (H, W, 9*planes) matrix; out-of-range
    # border taps stay zero (zero padding).
    patch_ref[...] = jnp.zeros(patch_ref.shape, patch_ref.dtype)
    for t, (dy, dx) in enumerate((a, b) for a in range(3) for b in range(3)):
        oh0, oh1 = max(0, 1 - dy), min(H, H + 1 - dy)     # valid output rows
        ow0, ow1 = max(0, 1 - dx), min(W, W + 1 - dx)     # valid output cols
        ih0, ih1 = oh0 + dy - 1, oh1 + dy - 1             # matching input rows
        iw0, iw1 = ow0 + dx - 1, ow1 + dx - 1             # matching input cols
        patch_ref[oh0:oh1, ow0:ow1, t * planes:(t + 1) * planes] = (
            h1_img[ih0:ih1, iw0:iw1, :])
    patches = patch_ref[...].reshape(H * W, 9 * planes).astype(cdt)
    h2 = jnp.dot(patches, w2_ref[...], preferred_element_type=jnp.float32)
    h2 = jnp.maximum(h2, 0.0)               # (H*W, planes) f32

    # ---- conv3 (1x1) fused with the 1x1-conv shortcut: one matmul ----------------
    #   pre = [h2 | x] @ [[W3], [Ws]]  ==  conv3(h2) + shortcut(x)
    lhs_ref[:, 0:planes] = h2
    lhs_ref[:, planes:planes + Cin] = x.astype(jnp.float32)
    lhs = lhs_ref[...].astype(cdt)          # (H*W, planes+Cin)
    pre = jnp.dot(lhs, w3s_ref[...], preferred_element_type=jnp.float32)

    out_ref[0] = jnp.maximum(pre, 0.0).astype(out_ref.dtype)
    if emit_pre:
        pre_ref[0] = pre.astype(pre_ref.dtype)


def bottleneck_pallas(x_nchw, w1_oihw, w2_oihw, w3_oihw, ws_oihw, *,
                      is_last=False, compute_dtype=jnp.float32):
    """x_nchw: (N, Cin, H, W) f32. Returns NCHW out (and preact if is_last)."""
    N, Cin, H, W = x_nchw.shape
    planes = w1_oihw.shape[0]
    Cout = w3_oihw.shape[0]
    cdt = compute_dtype

    # NCHW -> (N, H*W, C) channels-minor layout for the kernel (glue; in a full
    # network keep activations in this layout and hoist the weight packing to init).
    x = jnp.transpose(x_nchw, (0, 2, 3, 1)).reshape(N, H * W, Cin).astype(cdt)
    w1m = jnp.transpose(w1_oihw[:, :, 0, 0], (1, 0)).astype(cdt)             # (Cin, planes)
    w2f = jnp.transpose(w2_oihw, (2, 3, 1, 0)).reshape(9 * planes, planes).astype(cdt)
    w3s = jnp.concatenate(
        [jnp.transpose(w3_oihw[:, :, 0, 0], (1, 0)),                         # (planes, Cout)
         jnp.transpose(ws_oihw[:, :, 0, 0], (1, 0))], axis=0).astype(cdt)    # (Cin, Cout)

    kernel = functools.partial(_bottleneck_kernel, emit_pre=is_last)

    out_sds = jax.ShapeDtypeStruct((N, H * W, Cout), jnp.float32)
    out_spec = pl.BlockSpec((1, H * W, Cout), lambda n: (n, 0, 0))
    if is_last:
        out_shape = (out_sds, out_sds)
        out_specs = (out_spec, out_spec)
    else:
        out_shape = out_sds
        out_specs = out_spec

    flops = 2 * N * H * W * (Cin * planes + 9 * planes * planes
                             + (planes + Cin) * Cout)
    bytes_accessed = int(
        x.size * jnp.dtype(cdt).itemsize
        + (w1m.size + w2f.size + w3s.size) * jnp.dtype(cdt).itemsize
        + (2 if is_last else 1) * N * H * W * Cout * 4)

    fn = pl.pallas_call(
        kernel,
        out_shape=out_shape,
        grid_spec=pltpu.PrefetchScalarGridSpec(
            num_scalar_prefetch=0,
            grid=(N,),                                   # pipelined over batch
            in_specs=[
                pl.BlockSpec((1, H * W, Cin), lambda n: (n, 0, 0)),
                pl.BlockSpec((Cin, planes), lambda n: (0, 0)),
                pl.BlockSpec((9 * planes, planes), lambda n: (0, 0)),
                pl.BlockSpec((planes + Cin, Cout), lambda n: (0, 0)),
            ],
            out_specs=out_specs,
            scratch_shapes=[
                pltpu.VMEM((H, W, 9 * planes), jnp.float32),      # im2col patches
                pltpu.VMEM((H * W, planes + Cin), jnp.float32),   # [h2 | x] for fused conv3
            ],
        ),
        compiler_params=pltpu.CompilerParams(
            dimension_semantics=("parallel",)),
        cost_estimate=pl.CostEstimate(flops=int(flops), transcendentals=0,
                                      bytes_accessed=bytes_accessed),
    )

    if is_last:
        out_flat, pre_flat = fn(x, w1m, w2f, w3s)
        out = jnp.transpose(out_flat.reshape(N, H, W, Cout), (0, 3, 1, 2))
        pre = jnp.transpose(pre_flat.reshape(N, H, W, Cout), (0, 3, 1, 2))
        return out, pre
    out_flat = fn(x, w1m, w2f, w3s)
    return jnp.transpose(out_flat.reshape(N, H, W, Cout), (0, 3, 1, 2))


# ------------------------------ pure-JAX reference -------------------------------
def bottleneck_ref(x, w1, w2, w3, ws):
    conv = functools.partial(
        lax.conv_general_dilated,
        dimension_numbers=("NCHW", "OIHW", "NCHW"))
    out = jnp.maximum(conv(x, w1, (1, 1), [(0, 0), (0, 0)]), 0.0)
    out = jnp.maximum(conv(out, w2, (1, 1), [(1, 1), (1, 1)]), 0.0)
    out = conv(out, w3, (1, 1), [(0, 0), (0, 0)])
    out = out + conv(x, ws, (1, 1), [(0, 0), (0, 0)])
    pre = out
    return jnp.maximum(out, 0.0), pre


if __name__ == "__main__":
    # stride=1, in_planes != expansion*planes -> 1x1-conv shortcut branch exercised.
    N, in_planes, H, W = 2, 4, 16, 16
    planes, expansion = 4, 4
    Cout = expansion * planes

    key = jax.random.PRNGKey(0)
    kx, k1, k2, k3, ks = jax.random.split(key, 5)

    def kaiming(k, shape):
        fan_in = shape[1] * shape[2] * shape[3]
        return jax.random.normal(k, shape, jnp.float32) * jnp.sqrt(2.0 / fan_in)

    x = jax.random.normal(kx, (N, in_planes, H, W), jnp.float32)
    w1 = kaiming(k1, (planes, in_planes, 1, 1))        # conv1
    w2 = kaiming(k2, (planes, planes, 3, 3))           # conv2
    w3 = kaiming(k3, (Cout, planes, 1, 1))             # conv3
    ws = kaiming(ks, (Cout, in_planes, 1, 1))          # shortcut conv

    ref_out, ref_pre = bottleneck_ref(x, w1, w2, w3, ws)

    # is_last=True path: returns (out, preact) like the PyTorch module.
    out, pre = bottleneck_pallas(x, w1, w2, w3, ws, is_last=True)
    out = jax.block_until_ready(out)
    assert out.shape == (N, Cout, H, W)
    assert jnp.allclose(out, ref_out, atol=1e-4, rtol=1e-4), "out mismatch (is_last)"
    assert jnp.allclose(pre, ref_pre, atol=1e-4, rtol=1e-4), "preact mismatch"

    # Default path: single output, no preact HBM writeback.
    out2 = bottleneck_pallas(x, w1, w2, w3, ws, is_last=False)
    out2 = jax.block_until_ready(out2)
    assert jnp.allclose(out2, ref_out, atol=1e-4, rtol=1e-4), "out mismatch"

    # bf16 compute-dtype path (v6e/v7x MXU rate, f32 accumulation) — loose tolerance.
    out_bf16 = bottleneck_pallas(x, w1, w2, w3, ws, is_last=False,
                                 compute_dtype=jnp.bfloat16)
    out_bf16 = jax.block_until_ready(out_bf16)
    assert jnp.allclose(out_bf16, ref_out, atol=1.5e-1, rtol=1e-1), "bf16 out mismatch"

    print("KERNEL_OK")
</pallas_src>

<mosaic_0001>
module attributes {stable_mosaic.version = 11 : i64} {
  func.func @_bottleneck_kernel(%arg0: i32, %arg1: memref<1x256x4xf32, #tpu.memory_space<vmem>>, %arg2: memref<4x4xf32, #tpu.memory_space<vmem>>, %arg3: memref<36x4xf32, #tpu.memory_space<vmem>>, %arg4: memref<8x16xf32, #tpu.memory_space<vmem>>, %arg5: memref<1x256x16xf32, #tpu.memory_space<vmem>>, %arg6: memref<1x256x16xf32, #tpu.memory_space<vmem>>, %arg7: memref<16x16x36xf32, #tpu.memory_space<vmem>>, %arg8: memref<256x8xf32, #tpu.memory_space<vmem>>) attributes {dimension_semantics = [#tpu.dimension_semantics<parallel>], iteration_bounds = array<i64: 2>, scalar_prefetch = 0 : i64, scratch_operands = 2 : i64, tpu.core_type = #tpu.core_type<tc>, window_params = [{transform_indices = @transform_0, window_bounds = array<i64: 1, 256, 4>}, {pipeline_mode = #tpu.pipeline_mode<synchronous>, transform_indices = @transform_1, window_bounds = array<i64: 4, 4>}, {pipeline_mode = #tpu.pipeline_mode<synchronous>, transform_indices = @transform_2, window_bounds = array<i64: 36, 4>}, {pipeline_mode = #tpu.pipeline_mode<synchronous>, transform_indices = @transform_3, window_bounds = array<i64: 8, 16>}, {transform_indices = @transform_4, window_bounds = array<i64: 1, 256, 16>}, {transform_indices = @transform_5, window_bounds = array<i64: 1, 256, 16>}]} {
    %c0 = arith.constant 0 : index
    %c0_0 = arith.constant 0 : index
    %c0_1 = arith.constant 0 : index
    %0 = vector.load %arg1[%c0, %c0_0, %c0_1] : memref<1x256x4xf32, #tpu.memory_space<vmem>>, vector<1x256x4xf32>
    %1 = vector.shape_cast %0 : vector<1x256x4xf32> to vector<256x4xf32>
    %c0_2 = arith.constant 0 : index
    %c0_3 = arith.constant 0 : index
    %2 = vector.load %arg2[%c0_2, %c0_3] : memref<4x4xf32, #tpu.memory_space<vmem>>, vector<4x4xf32>
    %cst = arith.constant dense<0.000000e+00> : vector<256x4xf32>
    %3 = tpu.matmul %1, %2, %cst {dimension_numbers = #tpu.dot_dimension_numbers<[1], [0], [0], [1], [0, 0, 1, 1], [], []>} : vector<256x4xf32>, vector<4x4xf32>, vector<256x4xf32> -> vector<256x4xf32>
    %cst_4 = arith.constant 0.000000e+00 : f32
    %4 = vector.broadcast %cst_4 : f32 to vector<256x4xf32>
    %5 = arith.maximumf %3, %4 : vector<256x4xf32>
    %6 = vector.shape_cast %5 : vector<256x4xf32> to vector<16x16x4xf32>
    %cst_5 = arith.constant 0.000000e+00 : f32
    %7 = vector.broadcast %cst_5 : f32 to vector<16x16x36xf32>
    %c0_6 = arith.constant 0 : index
    %c0_7 = arith.constant 0 : index
    %c0_8 = arith.constant 0 : index
    %8 = vector.load %arg7[%c0_6, %c0_7, %c0_8] : memref<16x16x36xf32, #tpu.memory_space<vmem>>, vector<16x16x36xf32>
    tpu.vector_store %arg7[%c0_6, %c0_7, %c0_8], %7 {strides = array<i32>} : memref<16x16x36xf32, #tpu.memory_space<vmem>>, vector<16x16x36xf32>,
    %9 = vector.extract_strided_slice %6 {offsets = [0, 0, 0], sizes = [15, 15, 4], strides = [1, 1, 1]} : vector<16x16x4xf32> to vector<15x15x4xf32>
    %c1 = arith.constant 1 : index
    %c1_9 = arith.constant 1 : index
    %c0_10 = arith.constant 0 : index
    %10 = vector.load %arg7[%c1, %c1_9, %c0_10] : memref<16x16x36xf32, #tpu.memory_space<vmem>>, vector<15x15x4xf32>
    tpu.vector_store %arg7[%c1, %c1_9, %c0_10], %9 {strides = array<i32>} : memref<16x16x36xf32, #tpu.memory_space<vmem>>, vector<15x15x4xf32>,
    %11 = vector.extract_strided_slice %6 {offsets = [0, 0, 0], sizes = [15, 16, 4], strides = [1, 1, 1]} : vector<16x16x4xf32> to vector<15x16x4xf32>
    %c1_11 = arith.constant 1 : index
    %c0_12 = arith.constant 0 : index
    %c4 = arith.constant 4 : index
    %12 = vector.load %arg7[%c1_11, %c0_12, %c4] : memref<16x16x36xf32, #tpu.memory_space<vmem>>, vector<15x16x4xf32>
    tpu.vector_store %arg7[%c1_11, %c0_12, %c4], %11 {strides = array<i32>} : memref<16x16x36xf32, #tpu.memory_space<vmem>>, vector<15x16x4xf32>,
    %13 = vector.extract_strided_slice %6 {offsets = [0, 1, 0], sizes = [15, 15, 4], strides = [1, 1, 1]} : vector<16x16x4xf32> to vector<15x15x4xf32>
    %c1_13 = arith.constant 1 : index
    %c0_14 = arith.constant 0 : index
    %c8 = arith.constant 8 : index
    %14 = vector.load %arg7[%c1_13, %c0_14, %c8] : memref<16x16x36xf32, #tpu.memory_space<vmem>>, vector<15x15x4xf32>
    tpu.vector_store %arg7[%c1_13, %c0_14, %c8], %13 {strides = array<i32>} : memref<16x16x36xf32, #tpu.memory_space<vmem>>, vector<15x15x4xf32>,
    %15 = vector.extract_strided_slice %6 {offsets = [0, 0, 0], sizes = [16, 15, 4], strides = [1, 1, 1]} : vector<16x16x4xf32> to vector<16x15x4xf32>
    %c0_15 = arith.constant 0 : index
    %c1_16 = arith.constant 1 : index
    %c12 = arith.constant 12 : index
    %16 = vector.load %arg7[%c0_15, %c1_16, %c12] : memref<16x16x36xf32, #tpu.memory_space<vmem>>, vector<16x15x4xf32>
    tpu.vector_store %arg7[%c0_15, %c1_16, %c12], %15 {strides = array<i32>} : memref<16x16x36xf32, #tpu.memory_space<vmem>>, vector<16x15x4xf32>,
    %c0_17 = arith.constant 0 : index
    %c0_18 = arith.constant 0 : index
    %c16 = arith.constant 16 : index
    %17 = vector.load %arg7[%c0_17, %c0_18, %c16] : memref<16x16x36xf32, #tpu.memory_space<vmem>>, vector<16x16x4xf32>
    tpu.vector_store %arg7[%c0_17, %c0_18, %c16], %6 {strides = array<i32>} : memref<16x16x36xf32, #tpu.memory_space<vmem>>, vector<16x16x4xf32>,
    %18 = vector.extract_strided_slice %6 {offsets = [0, 1, 0], sizes = [16, 15, 4], strides = [1, 1, 1]} : vector<16x16x4xf32> to vector<16x15x4xf32>
    %c0_19 = arith.constant 0 : index
    %c0_20 = arith.constant 0 : index
    %c20 = arith.constant 20 : index
    %19 = vector.load %arg7[%c0_19, %c0_20, %c20] : memref<16x16x36xf32, #tpu.memory_space<vmem>>, vector<16x15x4xf32>
    tpu.vector_store %arg7[%c0_19, %c0_20, %c20], %18 {strides = array<i32>} : memref<16x16x36xf32, #tpu.memory_space<vmem>>, vector<16x15x4xf32>,
    %20 = vector.extract_strided_slice %6 {offsets = [1, 0, 0], sizes = [15, 15, 4], strides = [1, 1, 1]} : vector<16x16x4xf32> to vector<15x15x4xf32>
    %c0_21 = arith.constant 0 : index
    %c1_22 = arith.constant 1 : index
    %c24 = arith.constant 24 : index
    %21 = vector.load %arg7[%c0_21, %c1_22, %c24] : memref<16x16x36xf32, #tpu.memory_space<vmem>>, vector<15x15x4xf32>
    tpu.vector_store %arg7[%c0_21, %c1_22, %c24], %20 {strides = array<i32>} : memref<16x16x36xf32, #tpu.memory_space<vmem>>, vector<15x15x4xf32>,
    %22 = vector.extract_strided_slice %6 {offsets = [1, 0, 0], sizes = [15, 16, 4], strides = [1, 1, 1]} : vector<16x16x4xf32> to vector<15x16x4xf32>
    %c0_23 = arith.constant 0 : index
    %c0_24 = arith.constant 0 : index
    %c28 = arith.constant 28 : index
    %23 = vector.load %arg7[%c0_23, %c0_24, %c28] : memref<16x16x36xf32, #tpu.memory_space<vmem>>, vector<15x16x4xf32>
    tpu.vector_store %arg7[%c0_23, %c0_24, %c28], %22 {strides = array<i32>} : memref<16x16x36xf32, #tpu.memory_space<vmem>>, vector<15x16x4xf32>,
    %24 = vector.extract_strided_slice %6 {offsets = [1, 1, 0], sizes = [15, 15, 4], strides = [1, 1, 1]} : vector<16x16x4xf32> to vector<15x15x4xf32>
    %c0_25 = arith.constant 0 : index
    %c0_26 = arith.constant 0 : index
    %c32 = arith.constant 32 : index
    %25 = vector.load %arg7[%c0_25, %c0_26, %c32] : memref<16x16x36xf32, #tpu.memory_space<vmem>>, vector<15x15x4xf32>
    tpu.vector_store %arg7[%c0_25, %c0_26, %c32], %24 {strides = array<i32>} : memref<16x16x36xf32, #tpu.memory_space<vmem>>, vector<15x15x4xf32>,
    %c0_27 = arith.constant 0 : index
    %c0_28 = arith.constant 0 : index
    %c0_29 = arith.constant 0 : index
    %26 = vector.load %arg7[%c0_27, %c0_28, %c0_29] : memref<16x16x36xf32, #tpu.memory_space<vmem>>, vector<16x16x36xf32>
    %27 = vector.shape_cast %26 : vector<16x16x36xf32> to vector<256x36xf32>
    %c0_30 = arith.constant 0 : index
    %c0_31 = arith.constant 0 : index
    %28 = vector.load %arg3[%c0_30, %c0_31] : memref<36x4xf32, #tpu.memory_space<vmem>>, vector<36x4xf32>
    %cst_32 = arith.constant dense<0.000000e+00> : vector<256x4xf32>
    %29 = tpu.matmul %27, %28, %cst_32 {dimension_numbers = #tpu.dot_dimension_numbers<[1], [0], [0], [1], [0, 0, 1, 1], [], []>} : vector<256x36xf32>, vector<36x4xf32>, vector<256x4xf32> -> vector<256x4xf32>
    %cst_33 = arith.constant 0.000000e+00 : f32
    %30 = vector.broadcast %cst_33 : f32 to vector<256x4xf32>
    %31 = arith.maximumf %29, %30 : vector<256x4xf32>
    %c0_34 = arith.constant 0 : index
    %c0_35 = arith.constant 0 : index
    %32 = vector.load %arg8[%c0_34, %c0_35] : memref<256x8xf32, #tpu.memory_space<vmem>>, vector<256x4xf32>
    tpu.vector_store %arg8[%c0_34, %c0_35], %31 {strides = array<i32>} : memref<256x8xf32, #tpu.memory_space<vmem>>, vector<256x4xf32>,
    %c0_36 = arith.constant 0 : index
    %c4_37 = arith.constant 4 : index
    %33 = vector.load %arg8[%c0_36, %c4_37] : memref<256x8xf32, #tpu.memory_space<vmem>>, vector<256x4xf32>
    tpu.vector_store %arg8[%c0_36, %c4_37], %1 {strides = array<i32>} : memref<256x8xf32, #tpu.memory_space<vmem>>, vector<256x4xf32>,
    %c0_38 = arith.constant 0 : index
    %c0_39 = arith.constant 0 : index
    %34 = vector.load %arg8[%c0_38, %c0_39] : memref<256x8xf32, #tpu.memory_space<vmem>>, vector<256x8xf32>
    %c0_40 = arith.constant 0 : index
    %c0_41 = arith.constant 0 : index
    %35 = vector.load %arg4[%c0_40, %c0_41] : memref<8x16xf32, #tpu.memory_space<vmem>>, vector<8x16xf32>
    %cst_42 = arith.constant dense<0.000000e+00> : vector<256x16xf32>
    %36 = tpu.matmul %34, %35, %cst_42 {dimension_numbers = #tpu.dot_dimension_numbers<[1], [0], [0], [1], [0, 0, 1, 1], [], []>} : vector<256x8xf32>, vector<8x16xf32>, vector<256x16xf32> -> vector<256x16xf32>
    %cst_43 = arith.constant 0.000000e+00 : f32
    %37 = vector.broadcast %cst_43 : f32 to vector<256x16xf32>
    %38 = arith.maximumf %36, %37 : vector<256x16xf32>
    %c0_44 = arith.constant 0 : index
    %c0_45 = arith.constant 0 : index
    %c0_46 = arith.constant 0 : index
    %39 = vector.load %arg5[%c0_44, %c0_45, %c0_46] : memref<1x256x16xf32, #tpu.memory_space<vmem>>, vector<1x256x16xf32>
    %40 = vector.shape_cast %39 : vector<1x256x16xf32> to vector<256x16xf32>
    %41 = vector.shape_cast %38 : vector<256x16xf32> to vector<1x256x16xf32>
    tpu.vector_store %arg5[%c0_44, %c0_45, %c0_46], %41 {strides = array<i32>} : memref<1x256x16xf32, #tpu.memory_space<vmem>>, vector<1x256x16xf32>,
    %c0_47 = arith.constant 0 : index
    %c0_48 = arith.constant 0 : index
    %c0_49 = arith.constant 0 : index
    %42 = vector.load %arg6[%c0_47, %c0_48, %c0_49] : memref<1x256x16xf32, #tpu.memory_space<vmem>>, vector<1x256x16xf32>
    %43 = vector.shape_cast %42 : vector<1x256x16xf32> to vector<256x16xf32>
    %44 = vector.shape_cast %36 : vector<256x16xf32> to vector<1x256x16xf32>
    tpu.vector_store %arg6[%c0_47, %c0_48, %c0_49], %44 {strides = array<i32>} : memref<1x256x16xf32, #tpu.memory_space<vmem>>, vector<1x256x16xf32>,
    return
  }
  func.func @transform_0(%arg0: i32) -> (i32, i32, i32) {
    %c0_i32 = arith.constant 0 : i32
    %c0_i32_0 = arith.constant 0 : i32
    %c0_i32_1 = arith.constant 0 : i32
    return %arg0, %c0_i32, %c0_i32_0 : i32, i32, i32
  }
  func.func @transform_1(%arg0: i32) -> (i32, i32) {
    %c0_i32 = arith.constant 0 : i32
    %c0_i32_0 = arith.constant 0 : i32
    %c0_i32_1 = arith.constant 0 : i32
    return %c0_i32, %c0_i32_0 : i32, i32
  }
  func.func @transform_2(%arg0: i32) -> (i32, i32) {
    %c0_i32 = arith.constant 0 : i32
    %c0_i32_0 = arith.constant 0 : i32
    %c0_i32_1 = arith.constant 0 : i32
    return %c0_i32, %c0_i32_0 : i32, i32
  }
  func.func @transform_3(%arg0: i32) -> (i32, i32) {
    %c0_i32 = arith.constant 0 : i32
    %c0_i32_0 = arith.constant 0 : i32
    %c0_i32_1 = arith.constant 0 : i32
    return %c0_i32, %c0_i32_0 : i32, i32
  }
  func.func @transform_4(%arg0: i32) -> (i32, i32, i32) {
    %c0_i32 = arith.constant 0 : i32
    %c0_i32_0 = arith.constant 0 : i32
    %c0_i32_1 = arith.constant 0 : i32
    return %arg0, %c0_i32, %c0_i32_0 : i32, i32, i32
  }
  func.func @transform_5(%arg0: i32) -> (i32, i32, i32) {
    %c0_i32 = arith.constant 0 : i32
    %c0_i32_0 = arith.constant 0 : i32
    %c0_i32_1 = arith.constant 0 : i32
    return %arg0, %c0_i32, %c0_i32_0 : i32, i32, i32
  }
}

</mosaic_0001>

<bundles_post_ra>
// kernel: tpu_custom_call.1
= control target key start
LH: loop header
LB: loop body
LE: loop exit
PB: predicated region body
PF: predicated region fallthrough
CT: control target
= control target key end

     0   :  { %s3289_s18 = smov 0   ;;  %s4599_s0 = inlined_call_operand.vmem [shape: f32[2,256,4], index: 0, kind: input, shape index: {}]   ;;  %s4600_s1 = inlined_call_operand.vmem [shape: f32[4,4], index: 1, kind: input, shape index: {}]   ;;  %s4601_s2 = inlined_call_operand.vmem [shape: f32[36,4], index: 2, kind: input, shape index: {}]   ;;  %s4602_s3 = inlined_call_operand.vmem [shape: f32[8,16], index: 3, kind: input, shape index: {}]   ;;  %s4603_s4 = inlined_call_operand.vmem [shape: f32[2,256,16], index: 4, kind: output, shape index: {0}]   ;;  %s4604_s5 = inlined_call_operand.vmem [shape: f32[2,256,16], index: 5, kind: output, shape index: {1}]  }
   0x1 LB: > { %s2816_s19 = sadd.s32 4294967295, %s3248_s18   ;;  %p2820_p0 = scmp.ge.s32.totalorder %s3248_s18, 1  ;;  %s3248_s18 = sphi %s3289_s18, %s16_s18  }
   0x2   : > { %p190_p1 = scmp.lt.s32.totalorder %s3248_s18, 3 }
   0x4   : > { %p191_p2 = pnand %p2820_p0, %p190_p1 }
   0x5   : > { %p223_p3 = scmp.lt.s32.totalorder (!%p191_p2), %s2816_s19, 1  ;;  %s3251_s26 = smov (!%p191_p2), 12  }
   0x6   : > { %194 = sbr.rel (%p191_p2) target bundleno = 1229 (0x4cd), region = 36  ;;  %s3252_s27 = smov (!%p191_p2), 4  }
   0x7   : > { %s3253_s28 = smov (!%p191_p2), 16   ;;  %s3254_s29 = smov (!%p191_p2), 20  }
   0x8   : > { %s3255_s30 = smov (!%p191_p2), 8   ;;  %s3256_s6 = smov (!%p191_p2), 24  }
   0x9   : > { %s3257_s11 = smov (!%p191_p2), 28  }
   0xb   : > { %v270_v0 = vld [vmem:[%s4600_s1] sm:$0xf]  ;;  %vm368_vm0 = vcmask 1043456   ;;  %s4606_s19 = smov (!%p223_p3, %s2816_s19), 1  ;;  %vm271_vm1 = vcmask 31744   ;;  %vm629_vm2 = vcmask 293888  }
   0xc   : > { %3033 = vmatprep.subr.msk.mxu0 %vm368_vm0, %v270_v0  ;;  %3191 = vmatprep.subr.msk.mxu1 %vm368_vm0, %v270_v0  ;;  %s3304_s22 = sshll.u32 %s4606_s19, 8  ;;  %v3250_v15 = vmov 0.0   ;;  %vm664_vm3 = vcmask 30720   ;;  %v1759_v54 = vld [vmem:[%s4601_s2 + $0x20] sm:$0xf]  ;;  %v1758_v57 = vld [vmem:[%s4601_s2 + $0x18] sm:$0xff] }
   0xd   : > { %3034 = vmatpush3.msk.msra.mxu0 %vm368_vm0, %v270_v0  ;;  %3192 = vmatpush3.msk.msra.mxu1 %vm368_vm0, %v270_v0  ;;  %s3310_s25 = scalar_lea.vmem %s4599_s0, %s3304_s22  ;;  %631 = vst.msk [vmem:[#allocation2 + $0x8] sm:$0xff] %vm629_vm2, %v3250_v15  ;;  %630 = vst.msk [vmem:[#allocation2] sm:$0xff] %vm629_vm2, %v3250_v15  ;;  %v1757_v58 = vld [vmem:[%s4601_s2 + $0x10] sm:$0xff]  ;;  %v1756_v61 = vld [vmem:[%s4601_s2 + $0x8] sm:$0xff]  ;;  %s3258_s19 = smov 32   ;;  %vm1067_vm4 = vcmask 129120  }
   0xe   : > { %v238_v1 = vld [vmem:[%s3310_s25] sm:$0xff]  ;;  %v239_v2 = vld [vmem:[%s3310_s25 + $0x8] sm:$0xff]  ;;  %v240_v3 = vld [vmem:[%s3310_s25 + $0x10] sm:$0xff]  ;;  %632 = vst.msk [vmem:[#allocation2 + $0x10] sm:$0xff] %vm629_vm2, %v3250_v15  ;;  %3083 = vmatprep.subr.msk.mxu1 %vm368_vm0, %v1759_v54  ;;  %vm814_vm5 = vcmask 64544   ;;  %vm1065_vm6 = vcmask 130144  }
   0xf   : > { %3035 = vmatprep.mubr.msk.f32.mxu0 %vm271_vm1, %v238_v1  ;;  %v241_v4 = vld [vmem:[%s3310_s25 + $0x18] sm:$0xff]  ;;  %v242_v5 = vld [vmem:[%s3310_s25 + $0x20] sm:$0xff]  ;;  %v243_v6 = vld [vmem:[%s3310_s25 + $0x28] sm:$0xff]  ;;  %633 = vst.msk [vmem:[#allocation2 + $0x18] sm:$0xff] %vm629_vm2, %v3250_v15  ;;  %vm1195_vm7 = vcmask 162944   ;;  %vm937_vm8 = vcmask 97344  }
  0x10   : > { %3036 = vmatmul.mubr.msk.f32.vlgmr.msra.gmra.mxu0 %vm271_vm1, %v239_v2  ;;  %v244_v7 = vld [vmem:[%s3310_s25 + $0x30] sm:$0xff]  ;;  %v245_v8 = vld [vmem:[%s3310_s25 + $0x38] sm:$0xff]  ;;  %v246_v9 = vld [vmem:[%s3310_s25 + $0x40] sm:$0xff]  ;;  %634 = vst.msk [vmem:[#allocation2 + $0x20] sm:$0xff] %vm629_vm2, %v3250_v15  ;;  %vm1326_vm9 = vcmask 195744   ;;  %vm1324_vm10 = vcmask 195745  }
  0x11   : > { %3038 = vmatprep.mubr.msk.f32.mxu0 %vm271_vm1, %v240_v3  ;;  %v247_v10 = vld [vmem:[%s3310_s25 + $0x48] sm:$0xff]  ;;  %v248_v11 = vld [vmem:[%s3310_s25 + $0x50] sm:$0xff]  ;;  %v249_v12 = vld [vmem:[%s3310_s25 + $0x58] sm:$0xff]  ;;  %635 = vst.msk [vmem:[#allocation2 + $0x28] sm:$0xff] %vm629_vm2, %v3250_v15  ;;  %vm935_vm11 = vcmask 97345   ;;  %vm1450_vm12 = vcmask 227520  }
  0x12   : > { %v250_v13 = vld [vmem:[%s3310_s25 + $0x60] sm:$0xff]  ;;  %v251_v14 = vld [vmem:[%s3310_s25 + $0x68] sm:$0xff]  ;;  %636 = vst.msk [vmem:[#allocation2 + $0x30] sm:$0xff] %vm629_vm2, %v3250_v15  ;;  %637 = vst.msk [vmem:[#allocation2 + $0x38] sm:$0xff] %vm629_vm2, %v3250_v15  ;;  %vm1448_vm13 = vcmask 228544   ;;  %vm1570_vm14 = vcmask 261344  }
  0x13   : > { %638 = vst.msk [vmem:[#allocation2 + $0x40] sm:$0xff] %vm629_vm2, %v3250_v15  ;;  %639 = vst.msk [vmem:[#allocation2 + $0x48] sm:$0xff] %vm629_vm2, %v3250_v15  ;;  %v252_v16 = vld [vmem:[%s3310_s25 + $0x70] sm:$0xff]  ;;  %v253_v17 = vld [vmem:[%s3310_s25 + $0x78] sm:$0xff]  ;;  %vm1693_vm15 = vcmask 294144  }
  0x14   : > { %3039 = vmatmul.mubr.msk.f32.gmra.mxu0 %vm271_vm1, %v241_v4  ;;  %640 = vst.msk [vmem:[#allocation2 + $0x50] sm:$0xff] %vm629_vm2, %v3250_v15  ;;  %641 = vst.msk [vmem:[#allocation2 + $0x58] sm:$0xff] %vm629_vm2, %v3250_v15  ;;  %v254_v18 = vld [vmem:[%s3310_s25 + $0x80] sm:$0xff]  ;;  %v255_v19 = vld [vmem:[%s3310_s25 + $0x88] sm:$0xff] }
  0x15   : > { %3041 = vmatprep.mubr.msk.f32.mxu0 %vm271_vm1, %v242_v5  ;;  %642 = vst.msk [vmem:[#allocation2 + $0x60] sm:$0xff] %vm629_vm2, %v3250_v15  ;;  %643 = vst.msk [vmem:[#allocation2 + $0x68] sm:$0xff] %vm629_vm2, %v3250_v15  ;;  %3059 = vmatprep.mubr.msk.f32.mxu1 %vm271_vm1, %v254_v18  ;;  %v256_v20 = vld [vmem:[%s3310_s25 + $0x90] sm:$0xff]  ;;  %v257_v21 = vld [vmem:[%s3310_s25 + $0x98] sm:$0xff] }
  0x16   : > { %644 = vst.msk [vmem:[#allocation2 + $0x70] sm:$0xff] %vm629_vm2, %v3250_v15  ;;  %645 = vst.msk [vmem:[#allocation2 + $0x78] sm:$0xff] %vm629_vm2, %v3250_v15  ;;  %3060 = vmatmul.mubr.msk.f32.vlgmr.msra.gmra.mxu1 %vm271_vm1, %v255_v19  ;;  %v258_v22 = vld [vmem:[%s3310_s25 + $0xa0] sm:$0xff]  ;;  %v259_v23 = vld [vmem:[%s3310_s25 + $0xa8] sm:$0xff] }
  0x17   : > { %646 = vst.msk [vmem:[#allocation2 + $0x80] sm:$0xff] %vm629_vm2, %v3250_v15  ;;  %647 = vst.msk [vmem:[#allocation2 + $0x88] sm:$0xff] %vm629_vm2, %v3250_v15  ;;  %3062 = vmatprep.mubr.msk.f32.mxu1 %vm271_vm1, %v256_v20  ;;  %v260_v39 = vld [vmem:[%s3310_s25 + $0xb0] sm:$0xff]  ;;  %v261_v41 = vld [vmem:[%s3310_s25 + $0xb8] sm:$0xff]  ;;  %3084 = vmatpush3.msk.msra.mxu1 %vm368_vm0, %v1759_v54  ;;  %vm1691_vm0 = vcmask 294145  }
  0x18   : > { %3042 = vmatmul.mubr.msk.f32.gmra.mxu0 %vm271_vm1, %v243_v6  ;;  %648 = vst.msk [vmem:[#allocation2 + $0x90] sm:$0xff] %vm629_vm2, %v3250_v15  ;;  %649 = vst.msk [vmem:[#allocation2 + $0x98] sm:$0xff] %vm629_vm2, %v3250_v15  ;;  %v262_v48 = vld [vmem:[%s3310_s25 + $0xc0] sm:$0xff]  ;;  %v263_v50 = vld [vmem:[%s3310_s25 + $0xc8] sm:$0xff]  ;;  %3085 = vmatprep.subr.mxu1 %v1758_v57 }
  0x19   : > { %3044 = vmatprep.mubr.msk.f32.mxu0 %vm271_vm1, %v244_v7  ;;  %650 = vst.msk [vmem:[#allocation2 + $0xa0] sm:$0xff] %vm629_vm2, %v3250_v15  ;;  %651 = vst.msk [vmem:[#allocation2 + $0xa8] sm:$0xff] %vm629_vm2, %v3250_v15  ;;  %v264_v52 = vld [vmem:[%s3310_s25 + $0xd0] sm:$0xff]  ;;  %v265_v53 = vld [vmem:[%s3310_s25 + $0xd8] sm:$0xff]  ;;  %3086 = vmatpush3.msra.mxu1 %v1758_v57 }
  0x1a   : > { %652 = vst.msk [vmem:[#allocation2 + $0xb0] sm:$0xff] %vm629_vm2, %v3250_v15  ;;  %653 = vst.msk [vmem:[#allocation2 + $0xb8] sm:$0xff] %vm629_vm2, %v3250_v15  ;;  %3063 = vmatmul.mubr.msk.f32.gmra.mxu1 %vm271_vm1, %v257_v21  ;;  %v266_v55 = vld [vmem:[%s3310_s25 + $0xe0] sm:$0xff]  ;;  %v267_v56 = vld [vmem:[%s3310_s25 + $0xe8] sm:$0xff]  ;;  %3087 = vmatprep.subr.mxu1 %v1757_v58 }
  0x1b   : > { %654 = vst.msk [vmem:[#allocation2 + $0xc0] sm:$0xff] %vm629_vm2, %v3250_v15  ;;  %655 = vst.msk [vmem:[#allocation2 + $0xc8] sm:$0xff] %vm629_vm2, %v3250_v15  ;;  %3065 = vmatprep.mubr.msk.f32.mxu1 %vm271_vm1, %v258_v22  ;;  %v268_v59 = vld [vmem:[%s3310_s25 + $0xf0] sm:$0xff]  ;;  %v269_v60 = vld [vmem:[%s3310_s25 + $0xf8] sm:$0xff]  ;;  %3088 = vmatpush3.msra.mxu1 %v1757_v58 }
  0x1c   : > { %3045 = vmatmul.mubr.msk.f32.gmra.mxu0 %vm271_vm1, %v245_v8  ;;  %656 = vst.msk [vmem:[#allocation2 + $0xd0] sm:$0xff] %vm629_vm2, %v3250_v15  ;;  %657 = vst.msk [vmem:[#allocation2 + $0xd8] sm:$0xff] %vm629_vm2, %v3250_v15  ;;  %3089 = vmatprep.subr.mxu1 %v1756_v61  ;;  %v1755_v62 = vld [vmem:[%s4601_s2] sm:$0xff] }
  0x1d   : > { %3047 = vmatprep.mubr.msk.f32.mxu0 %vm271_vm1, %v246_v9  ;;  %658 = vst.msk [vmem:[#allocation2 + $0xe0] sm:$0xff] %vm629_vm2, %v3250_v15  ;;  %659 = vst.msk [vmem:[#allocation2 + $0xe8] sm:$0xff] %vm629_vm2, %v3250_v15  ;;  %3090 = vmatpush3.msra.mxu1 %v1756_v61 }
  0x1e   : > { %660 = vst.msk [vmem:[#allocation2 + $0xf0] sm:$0xff] %vm629_vm2, %v3250_v15  ;;  %661 = vst.msk [vmem:[#allocation2 + $0xf8] sm:$0xff] %vm629_vm2, %v3250_v15  ;;  %3066 = vmatmul.mubr.msk.f32.gmra.mxu1 %vm271_vm1, %v259_v23  ;;  %3091 = vmatprep.subr.mxu1 %v1755_v62 }
  0x1f   : > { %3068 = vmatprep.mubr.msk.f32.mxu1 %vm271_vm1, %v260_v39  ;;  %3092 = vmatpush3.msra.mxu1 %v1755_v62 }
  0x20   : > { %3048 = vmatmul.mubr.msk.f32.gmra.mxu0 %vm271_vm1, %v247_v10 }
  0x21   : > { %3050 = vmatprep.mubr.msk.f32.mxu0 %vm271_vm1, %v248_v11 }
  0x22   : > { %3069 = vmatmul.mubr.msk.f32.gmra.mxu1 %vm271_vm1, %v261_v41 }
  0x23   : > { %3071 = vmatprep.mubr.msk.f32.mxu1 %vm271_vm1, %v262_v48 }
  0x24   : > { %3051 = vmatmul.mubr.msk.f32.gmra.mxu0 %vm271_vm1, %v249_v12 }
  0x25   : > { %3053 = vmatprep.mubr.msk.f32.mxu0 %vm271_vm1, %v250_v13 }
  0x26   : > { %3072 = vmatmul.mubr.msk.f32.gmra.mxu1 %vm271_vm1, %v263_v50 }
  0x27   : > { %3074 = vmatprep.mubr.msk.f32.mxu1 %vm271_vm1, %v264_v52 }
  0x28   : > { %3054 = vmatmul.mubr.msk.f32.gmra.mxu0 %vm271_vm1, %v251_v14 }
  0x29   : > { %3056 = vmatprep.mubr.msk.f32.mxu0 %vm271_vm1, %v252_v16 }
  0x2a   : > { %3075 = vmatmul.mubr.msk.f32.gmra.mxu1 %vm271_vm1, %v265_v53 }
  0x2b   : > { %3077 = vmatprep.mubr.msk.f32.mxu1 %vm271_vm1, %v266_v55 }
  0x2c   : > { %3057 = vmatmul.mubr.msk.f32.gmra.mxu0 %vm271_vm1, %v253_v17 }
  0x2e   : > { %3078 = vmatmul.mubr.msk.f32.gmra.mxu1 %vm271_vm1, %v267_v56 }
  0x2f   : > { %3080 = vmatprep.mubr.msk.f32.mxu1 %vm271_vm1, %v268_v59 }
  0x32   : > { %3081 = vmatmul.mubr.msk.f32.gmra.mxu1 %vm271_vm1, %v269_v60 }
  0xd0   : > { %v3037_v24 = vpop.f32.mrf.mxu0 }
  0xd1   : > { %v598_v25 = vmax.f32 %v3037_v24, 0.0 }
  0xd2   : > { %v438_v26 = vpop.f32.mrf.mxu0 }
  0xd3   : > { %v597_v27 = vmax.f32 %v438_v26, 0.0  ;;  %971 = vrot.lane.b32.xlu1 %v598_v25, %s3251_s26  ;;  %726 = vrot.lane.b32.xlu0 %v598_v25, %s3252_s27  ;;  %665 = vst.msk [vmem:[#allocation2 + $0x19] sm:$0x7f] %vm664_vm3, %v598_v25 }
  0xd4   : > { %v3040_v28 = vpop.f32.mrf.mxu0 }
  0xd5   : > { %v3391_v29 = vmax.f32 %v3040_v28, 0.0  ;;  %663 = vst.msk [vmem:[#allocation2 + $0x11] sm:$0xff] %vm271_vm1, %v597_v27 }
  0xd6   : > { %v448_v30 = vpop.f32.mrf.mxu0  ;;  %v3061_v7 = vpop.f32.mrf.mxu1 }
  0xd7   : > { %1101 = vrot.lane.b32.xlu1 %v598_v25, %s3253_s28  ;;  %724 = vrot.lane.b32.xlu0 %v597_v27, %s3252_s27  ;;  %v3396_v31 = vmax.f32 %v448_v30, 0.0  ;;  %667 = vst.msk [vmem:[#allocation2 + $0x29] sm:$0x7f] %vm664_vm3, %v3391_v29  ;;  %v3585_v8 = vmax.f32 %v3061_v7, 0.0 }
  0xd8   : > { %v3043_v32 = vpop.f32.mrf.mxu0  ;;  %v518_v9 = vpop.f32.mrf.mxu1 }
  0xd9   : > { %v3400_v33 = vmax.f32 %v3043_v32, 0.0  ;;  %666 = vst.msk [vmem:[#allocation2 + $0x21] sm:$0xff] %vm271_vm1, %v3396_v31  ;;  %v3593_v10 = vmax.f32 %v518_v9, 0.0 }
  0xda   : > { %v458_v34 = vpop.f32.mrf.mxu0  ;;  %681 = vst.msk [vmem:[#allocation2 + $0x99] sm:$0x7f] %vm664_vm3, %v3585_v8 }
  0xdb   : > { %1230 = vrot.lane.b32.xlu1 %v598_v25, %s3254_s29  ;;  %969 = vrot.lane.b32.xlu0 %v597_v27, %s3251_s26  ;;  %v3406_v35 = vmax.f32 %v458_v34, 0.0  ;;  %669 = vst.msk [vmem:[#allocation2 + $0x39] sm:$0x7f] %vm664_vm3, %v3400_v33 }
  0xdc   : > { %v3046_v36 = vpop.f32.mrf.mxu0  ;;  %680 = vst.msk [vmem:[#allocation2 + $0x91] sm:$0xff] %vm271_vm1, %v3593_v10 }
  0xdd   : > { %v3410_v37 = vmax.f32 %v3046_v36, 0.0  ;;  %668 = vst.msk [vmem:[#allocation2 + $0x31] sm:$0xff] %vm271_vm1, %v3406_v35 }
  0xde   : > { %v468_v38 = vpop.f32.mrf.mxu0 }
  0xdf   : > { %847 = vrot.lane.b32.xlu1 %v598_v25, %s3255_s30  ;;  %1099 = vrot.lane.b32.xlu0 %v597_v27, %s3253_s28  ;;  %v3417_v40 = vmax.f32 %v468_v38, 0.0  ;;  %671 = vst.msk [vmem:[#allocation2 + $0x49] sm:$0x7f] %vm664_vm3, %v3410_v37  ;;  %v3064_v25 = vpop.f32.mrf.mxu1 }
  0xe0   : > { %v3049_v42 = vpop.f32.mrf.mxu0  ;;  %v3639_v28 = vmax.f32 %v3064_v25, 0.0 }
  0xe1   : > { %v3423_v43 = vmax.f32 %v3049_v42, 0.0  ;;  %670 = vst.msk [vmem:[#allocation2 + $0x41] sm:$0xff] %vm271_vm1, %v3417_v40 }
  0xe2   : > { %v478_v44 = vpop.f32.mrf.mxu0  ;;  %683 = vst.msk [vmem:[#allocation2 + $0xa9] sm:$0x7f] %vm664_vm3, %v3639_v28 }
  0xe3   : > { %1228 = vrot.lane.b32.xlu0 %v597_v27, %s3254_s29  ;;  %730 = vrot.lane.b32.xlu1 %v3391_v29, %s3252_s27  ;;  %v3431_v45 = vmax.f32 %v478_v44, 0.0  ;;  %673 = vst.msk [vmem:[#allocation2 + $0x59] sm:$0x7f] %vm664_vm3, %v3423_v43 }
  0xe4   : > { %v3052_v46 = vpop.f32.mrf.mxu0 }
  0xe5   : > { %672 = vst.msk [vmem:[#allocation2 + $0x51] sm:$0xff] %vm271_vm1, %v3431_v45  ;;  %v3437_v47 = vmax.f32 %v3052_v46, 0.0 }
  0xe6   : > { %v488_v49 = vpop.f32.mrf.mxu0 }
  0xe7   : > { %845 = vrot.lane.b32.xlu0 %v597_v27, %s3255_s30  ;;  %1360 = vrot.lane.b32.xlu1 %v3391_v29, %s3256_s6  ;;  %675 = vst.msk [vmem:[#allocation2 + $0x69] sm:$0x7f] %vm664_vm3, %v3437_v47  ;;  %v3447_v51 = vmax.f32 %v488_v49, 0.0 }
  0xe8   : > { %v3055_v63 = vpop.f32.mrf.mxu0 }
  0xe9   : > { %674 = vst.msk [vmem:[#allocation2 + $0x61] sm:$0xff] %vm271_vm1, %v3447_v51  ;;  %v3505_v0 = vmax.f32 %v3055_v63, 0.0 }
  0xea   : > { %v498_v1 = vpop.f32.mrf.mxu0 }
  0xeb   : > { %975 = vrot.lane.b32.xlu1 %v3391_v29, %s3251_s26  ;;  %1358 = vrot.lane.b32.xlu0 %v3396_v31, %s3256_s6  ;;  %677 = vst.msk [vmem:[#allocation2 + $0x79] sm:$0x7f] %vm664_vm3, %v3505_v0  ;;  %v3513_v2 = vmax.f32 %v498_v1, 0.0 }
  0xec   : > { %v3058_v3 = vpop.f32.mrf.mxu0 }
  0xed   : > { %676 = vst.msk [vmem:[#allocation2 + $0x71] sm:$0xff] %vm271_vm1, %v3513_v2  ;;  %v3545_v4 = vmax.f32 %v3058_v3, 0.0 }
  0xee   : > { %v508_v5 = vpop.f32.mrf.mxu0 }
  0xef   : > { %1482 = vrot.lane.b32.xlu1 %v3391_v29, %s3257_s11  ;;  %973 = vrot.lane.b32.xlu0 %v3396_v31, %s3251_s26  ;;  %679 = vst.msk [vmem:[#allocation2 + $0x89] sm:$0x7f] %vm664_vm3, %v3545_v4  ;;  %v3553_v6 = vmax.f32 %v508_v5, 0.0 }
  0xf1   : > { %678 = vst.msk [vmem:[#allocation2 + $0x81] sm:$0xff] %vm271_vm1, %v3553_v6 }
  0xf3   : > { %1105 = vrot.lane.b32.xlu1 %v3391_v29, %s3253_s28  ;;  %1480 = vrot.lane.b32.xlu0 %v3396_v31, %s3257_s11 }
  0xf7   : > { %1603 = vrot.lane.b32.xlu1 %v3391_v29, %s3258_s19  ;;  %1103 = vrot.lane.b32.xlu0 %v3396_v31, %s3253_s28 }
  0xfb   : > { %1234 = vrot.lane.b32.xlu1 %v3391_v29, %s3254_s29  ;;  %1601 = vrot.lane.b32.xlu0 %v3396_v31, %s3258_s19 }
  0xff   : > { %851 = vrot.lane.b32.xlu1 %v3391_v29, %s3255_s30  ;;  %1232 = vrot.lane.b32.xlu0 %v3396_v31, %s3254_s29  ;;  %v528_v29 = vpop.f32.mrf.mxu1 }
 0x100   : > { %v3649_v30 = vmax.f32 %v528_v29, 0.0 }
 0x101   : > { %v3067_v48 = vpop.f32.mrf.mxu1 }
 0x102   : > { %682 = vst.msk [vmem:[#allocation2 + $0xa1] sm:$0xff] %vm271_vm1, %v3649_v30  ;;  %v3697_v52 = vmax.f32 %v3067_v48, 0.0 }
 0x103   : > { %849 = vrot.lane.b32.xlu0 %v3396_v31, %s3255_s30  ;;  %728 = vrot.lane.b32.xlu1 %v3396_v31, %s3252_s27  ;;  %v538_v53 = vpop.f32.mrf.mxu1 }
 0x104   : > { %685 = vst.msk [vmem:[#allocation2 + $0xb9] sm:$0x7f] %vm664_vm3, %v3697_v52  ;;  %v3707_v54 = vmax.f32 %v538_v53, 0.0 }
 0x106   : > { %684 = vst.msk [vmem:[#allocation2 + $0xb1] sm:$0xff] %vm271_vm1, %v3707_v54 }
 0x107   : > { %734 = vrot.lane.b32.xlu1 %v3400_v33, %s3252_s27  ;;  %732 = vrot.lane.b32.xlu0 %v3406_v35, %s3252_s27 }
 0x10b   : > { %1364 = vrot.lane.b32.xlu1 %v3400_v33, %s3256_s6  ;;  %1362 = vrot.lane.b32.xlu0 %v3406_v35, %s3256_s6 }
 0x10f   : > { %979 = vrot.lane.b32.xlu1 %v3400_v33, %s3251_s26  ;;  %977 = vrot.lane.b32.xlu0 %v3406_v35, %s3251_s26 }
 0x113   : > { %1486 = vrot.lane.b32.xlu1 %v3400_v33, %s3257_s11  ;;  %1484 = vrot.lane.b32.xlu0 %v3406_v35, %s3257_s11 }
 0x117   : > { %1109 = vrot.lane.b32.xlu1 %v3400_v33, %s3253_s28  ;;  %1107 = vrot.lane.b32.xlu0 %v3406_v35, %s3253_s28 }
 0x11b   : > { %1607 = vrot.lane.b32.xlu1 %v3400_v33, %s3258_s19  ;;  %1605 = vrot.lane.b32.xlu0 %v3406_v35, %s3258_s19 }
 0x11f   : > { %1238 = vrot.lane.b32.xlu1 %v3400_v33, %s3254_s29  ;;  %1236 = vrot.lane.b32.xlu0 %v3406_v35, %s3254_s29 }
 0x123   : > { %855 = vrot.lane.b32.xlu1 %v3400_v33, %s3255_s30  ;;  %853 = vrot.lane.b32.xlu0 %v3406_v35, %s3255_s30 }
 0x127   : > { %738 = vrot.lane.b32.xlu1 %v3410_v37, %s3252_s27  ;;  %736 = vrot.lane.b32.xlu0 %v3417_v40, %s3252_s27 }
 0x12b   : > { %1368 = vrot.lane.b32.xlu1 %v3410_v37, %s3256_s6  ;;  %1366 = vrot.lane.b32.xlu0 %v3417_v40, %s3256_s6 }
 0x12f   : > { %983 = vrot.lane.b32.xlu1 %v3410_v37, %s3251_s26  ;;  %981 = vrot.lane.b32.xlu0 %v3417_v40, %s3251_s26 }
 0x133   : > { %1490 = vrot.lane.b32.xlu1 %v3410_v37, %s3257_s11  ;;  %1488 = vrot.lane.b32.xlu0 %v3417_v40, %s3257_s11 }
 0x137   : > { %1113 = vrot.lane.b32.xlu1 %v3410_v37, %s3253_s28  ;;  %1111 = vrot.lane.b32.xlu0 %v3417_v40, %s3253_s28 }
 0x13b   : > { %1611 = vrot.lane.b32.xlu1 %v3410_v37, %s3258_s19  ;;  %1609 = vrot.lane.b32.xlu0 %v3417_v40, %s3258_s19 }
 0x13f   : > { %1242 = vrot.lane.b32.xlu1 %v3410_v37, %s3254_s29  ;;  %1240 = vrot.lane.b32.xlu0 %v3417_v40, %s3254_s29 }
 0x143   : > { %859 = vrot.lane.b32.xlu1 %v3410_v37, %s3255_s30  ;;  %857 = vrot.lane.b32.xlu0 %v3417_v40, %s3255_s30 }
 0x145   : > { %v972_v11 = vpop.permute.xlu1 %971  ;;  %v727_v12 = vpop.permute.xlu0 %726 }
 0x146   : > { %1068 = vst.msk [vmem:[#allocation2 + $0x9] sm:$0x7f] %vm1067_vm4, %v972_v11 }
 0x147   : > { %816 = vst.msk [vmem:[#allocation2 + $0x18] sm:$0xff] %vm814_vm5, %v727_v12  ;;  %742 = vrot.lane.b32.xlu1 %v3423_v43, %s3252_s27  ;;  %740 = vrot.lane.b32.xlu0 %v3431_v45, %s3252_s27 }
 0x149   : > { %v1102_v13 = vpop.permute.xlu1 %1101  ;;  %v725_v14 = vpop.permute.xlu0 %724 }
 0x14a   : > { %815 = vst.msk [vmem:[#allocation2 + $0x10] sm:$0xff] %vm814_vm5, %v725_v14 }
 0x14b   : > { %1372 = vrot.lane.b32.xlu1 %v3423_v43, %s3256_s6  ;;  %1370 = vrot.lane.b32.xlu0 %v3431_v45, %s3256_s6 }
 0x14d   : > { %v1231_v15 = vpop.permute.xlu1 %1230  ;;  %v970_v16 = vpop.permute.xlu0 %969 }
 0x14e   : > { %1066 = vst.msk [vmem:[#allocation2 + $0x1] sm:$0xff] %vm1065_vm6, %v970_v16 }
 0x14f   : > { %987 = vrot.lane.b32.xlu1 %v3423_v43, %s3251_s26  ;;  %985 = vrot.lane.b32.xlu0 %v3431_v45, %s3251_s26  ;;  %1197 = vst.msk [vmem:[#allocation2 + $0x8] sm:$0xff] %vm1195_vm7, %v1102_v13  ;;  %v3070_v13 = vpop.f32.mrf.mxu1 }
 0x150   : > { %v3759_v14 = vmax.f32 %v3070_v13, 0.0 }
 0x151   : > { %v848_v17 = vpop.permute.xlu1 %847  ;;  %v1100_v18 = vpop.permute.xlu0 %1099 }
 0x152   : > { %938 = vst.msk [vmem:[#allocation2 + $0x17] sm:$0xff] %vm937_vm8, %v848_v17 }
 0x153   : > { %1196 = vst.msk [vmem:[#allocation2] sm:$0xff] %vm1195_vm7, %v1100_v18  ;;  %1494 = vrot.lane.b32.xlu1 %v3423_v43, %s3257_s11  ;;  %1492 = vrot.lane.b32.xlu0 %v3431_v45, %s3257_s11 }
 0x154   : > { %1327 = vst.msk [vmem:[#allocation2 + $0x7] sm:$0xff] %vm1326_vm9, %v1231_v15  ;;  %v548_v15 = vpop.f32.mrf.mxu1 }
 0x155   : > { %v1229_v19 = vpop.permute.xlu0 %1228  ;;  %v731_v20 = vpop.permute.xlu1 %730  ;;  %687 = vst.msk [vmem:[#allocation2 + $0xc9] sm:$0x7f] %vm664_vm3, %v3759_v14  ;;  %v3765_v18 = vmax.f32 %v548_v15, 0.0 }
 0x156   : > { %1325 = vst.msk [vmem:[#allocation2 - $0x1] sm:$0xfe] %vm1324_vm10, %v1229_v19 }
 0x157   : > { %818 = vst.msk [vmem:[#allocation2 + $0x28] sm:$0xff] %vm814_vm5, %v731_v20  ;;  %1117 = vrot.lane.b32.xlu1 %v3423_v43, %s3253_s28  ;;  %1115 = vrot.lane.b32.xlu0 %v3431_v45, %s3253_s28 }
 0x158   : > { %686 = vst.msk [vmem:[#allocation2 + $0xc1] sm:$0xff] %vm271_vm1, %v3765_v18 }
 0x159   : > { %v846_v21 = vpop.permute.xlu0 %845  ;;  %v1361_v22 = vpop.permute.xlu1 %1360 }
 0x15a   : > { %936 = vst.msk [vmem:[#allocation2 + $0xf] sm:$0xfe] %vm935_vm11, %v846_v21 }
 0x15b   : > { %1451 = vst.msk [vmem:[#allocation2 + $0x9] sm:$0x7f] %vm1450_vm12, %v1361_v22  ;;  %1615 = vrot.lane.b32.xlu1 %v3423_v43, %s3258_s19  ;;  %1613 = vrot.lane.b32.xlu0 %v3431_v45, %s3258_s19 }
 0x15d   : > { %v976_v23 = vpop.permute.xlu1 %975  ;;  %v1359_v24 = vpop.permute.xlu0 %1358 }
 0x15e   : > { %1070 = vst.msk [vmem:[#allocation2 + $0x19] sm:$0x7f] %vm1067_vm4, %v976_v23 }
 0x15f   : > { %1449 = vst.msk [vmem:[#allocation2 + $0x1] sm:$0xff] %vm1448_vm13, %v1359_v24  ;;  %1246 = vrot.lane.b32.xlu1 %v3423_v43, %s3254_s29  ;;  %1244 = vrot.lane.b32.xlu0 %v3431_v45, %s3254_s29 }
 0x161   : > { %v1483_v26 = vpop.permute.xlu1 %1482  ;;  %v974_v27 = vpop.permute.xlu0 %973 }
 0x162   : > { %1572 = vst.msk [vmem:[#allocation2 + $0x8] sm:$0xff] %vm1570_vm14, %v1483_v26 }
 0x163   : > { %1069 = vst.msk [vmem:[#allocation2 + $0x11] sm:$0xff] %vm1065_vm6, %v974_v27  ;;  %863 = vrot.lane.b32.xlu1 %v3423_v43, %s3255_s30  ;;  %861 = vrot.lane.b32.xlu0 %v3431_v45, %s3255_s30 }
 0x165   : > { %v1106_v31 = vpop.permute.xlu1 %1105  ;;  %v1481_v32 = vpop.permute.xlu0 %1480 }
 0x166   : > { %1199 = vst.msk [vmem:[#allocation2 + $0x18] sm:$0xff] %vm1195_vm7, %v1106_v31 }
 0x167   : > { %1571 = vst.msk [vmem:[#allocation2] sm:$0xff] %vm1570_vm14, %v1481_v32  ;;  %1376 = vrot.lane.b32.xlu1 %v3437_v47, %s3256_s6  ;;  %1374 = vrot.lane.b32.xlu0 %v3447_v51, %s3256_s6 }
 0x169   : > { %v1604_v33 = vpop.permute.xlu1 %1603  ;;  %v1104_v34 = vpop.permute.xlu0 %1103 }
 0x16a   : > { %1694 = vst.msk [vmem:[#allocation2 + $0x7] sm:$0xff] %vm1693_vm15, %v1604_v33 }
 0x16b   : > { %1198 = vst.msk [vmem:[#allocation2 + $0x10] sm:$0xff] %vm1195_vm7, %v1104_v34  ;;  %991 = vrot.lane.b32.xlu1 %v3437_v47, %s3251_s26  ;;  %989 = vrot.lane.b32.xlu0 %v3447_v51, %s3251_s26 }
 0x16d   : > { %v1235_v35 = vpop.permute.xlu1 %1234  ;;  %v1602_v36 = vpop.permute.xlu0 %1601 }
 0x16e   : > { %1329 = vst.msk [vmem:[#allocation2 + $0x17] sm:$0xff] %vm1326_vm9, %v1235_v35 }
 0x16f   : > { %1692 = vst.msk [vmem:[#allocation2 - $0x1] sm:$0xfe] %vm1691_vm0, %v1602_v36  ;;  %1498 = vrot.lane.b32.xlu1 %v3437_v47, %s3257_s11  ;;  %1496 = vrot.lane.b32.xlu0 %v3447_v51, %s3257_s11 }
 0x171   : > { %v852_v37 = vpop.permute.xlu1 %851  ;;  %v1233_v38 = vpop.permute.xlu0 %1232  ;;  %v1724_v42 = vld [vmem:[#allocation2 + $0x8] sm:$0xff] }
 0x172   : > { %1328 = vst.msk [vmem:[#allocation2 + $0xf] sm:$0xfe] %vm1324_vm10, %v1233_v38 }
 0x173   : > { %1121 = vrot.lane.b32.xlu1 %v3437_v47, %s3253_s28  ;;  %1119 = vrot.lane.b32.xlu0 %v3447_v51, %s3253_s28 }
 0x175   : > { %v850_v39 = vpop.permute.xlu0 %849  ;;  %v729_v40 = vpop.permute.xlu1 %728 }
 0x176   : > { %v1723_v41 = vld [vmem:[#allocation2] sm:$0xff]  ;;  %817 = vst.msk [vmem:[#allocation2 + $0x20] sm:$0xff] %vm814_vm5, %v729_v40 }
 0x177   : > { %3093 = vmatprep.mubr.msk.f32.mxu1 %vm629_vm2, %v1723_v41  ;;  %939 = vst.msk [vmem:[#allocation2 + $0x1f] sm:$0xfe] %vm935_vm11, %v850_v39  ;;  %1619 = vrot.lane.b32.xlu1 %v3437_v47, %s3258_s19 }
 0x178   : > { %940 = vst.msk [vmem:[#allocation2 + $0x27] sm:$0xff] %vm937_vm8, %v852_v37  ;;  %3094 = vmatmul.mubr.msk.f32.vlgmr.msra.gmra.mxu1 %vm629_vm2, %v1724_v42  ;;  %1617 = vrot.lane.b32.xlu0 %v3447_v51, %s3258_s19 }
 0x179   : > { %v735_v43 = vpop.permute.xlu1 %734  ;;  %v733_v44 = vpop.permute.xlu0 %732 }
 0x17a   : > { %820 = vst.msk [vmem:[#allocation2 + $0x38] sm:$0xff] %vm814_vm5, %v735_v43  ;;  %819 = vst.msk [vmem:[#allocation2 + $0x30] sm:$0xff] %vm814_vm5, %v733_v44 }
 0x17b   : > { %746 = vrot.lane.b32.xlu1 %v3437_v47, %s3252_s27 }
 0x17c   : > { %744 = vrot.lane.b32.xlu0 %v3447_v51, %s3252_s27 }
 0x17d   : > { %v1365_v45 = vpop.permute.xlu1 %1364  ;;  %v1363_v46 = vpop.permute.xlu0 %1362 }
 0x17e   : > { %1453 = vst.msk [vmem:[#allocation2 + $0x19] sm:$0x7f] %vm1450_vm12, %v1365_v45 }
 0x17f   : > { %1452 = vst.msk [vmem:[#allocation2 + $0x11] sm:$0xff] %vm1448_vm13, %v1363_v46  ;;  %1250 = vrot.lane.b32.xlu1 %v3437_v47, %s3254_s29 }
 0x180   : > { %1248 = vrot.lane.b32.xlu0 %v3447_v51, %s3254_s29 }
 0x181   : > { %v980_v49 = vpop.permute.xlu1 %979  ;;  %v978_v50 = vpop.permute.xlu0 %977 }
 0x182   : > { %1072 = vst.msk [vmem:[#allocation2 + $0x29] sm:$0x7f] %vm1067_vm4, %v980_v49 }
 0x183   : > { %1071 = vst.msk [vmem:[#allocation2 + $0x21] sm:$0xff] %vm1065_vm6, %v978_v50  ;;  %867 = vrot.lane.b32.xlu1 %v3437_v47, %s3255_s30 }
 0x184   : > { %865 = vrot.lane.b32.xlu0 %v3447_v51, %s3255_s30 }
 0x185   : > { %v1487_v55 = vpop.permute.xlu1 %1486  ;;  %v1485_v56 = vpop.permute.xlu0 %1484 }
 0x186   : > { %1574 = vst.msk [vmem:[#allocation2 + $0x18] sm:$0xff] %vm1570_vm14, %v1487_v55  ;;  %1573 = vst.msk [vmem:[#allocation2 + $0x10] sm:$0xff] %vm1570_vm14, %v1485_v56 }
 0x187   : > { %1380 = vrot.lane.b32.xlu1 %v3505_v0, %s3256_s6 }
 0x188   : > { %1378 = vrot.lane.b32.xlu0 %v3513_v2, %s3256_s6 }
 0x189   : > { %v1110_v47 = vpop.permute.xlu1 %1109  ;;  %v1108_v57 = vpop.permute.xlu0 %1107 }
 0x18a   : > { %1201 = vst.msk [vmem:[#allocation2 + $0x28] sm:$0xff] %vm1195_vm7, %v1110_v47  ;;  %1200 = vst.msk [vmem:[#allocation2 + $0x20] sm:$0xff] %vm1195_vm7, %v1108_v57 }
 0x18b   : > { %995 = vrot.lane.b32.xlu1 %v3505_v0, %s3251_s26 }
 0x18c   : > { %993 = vrot.lane.b32.xlu0 %v3513_v2, %s3251_s26 }
 0x18d   : > { %v1608_v51 = vpop.permute.xlu1 %1607  ;;  %v1606_v58 = vpop.permute.xlu0 %1605 }
 0x18e   : > { %1696 = vst.msk [vmem:[#allocation2 + $0x17] sm:$0xff] %vm1693_vm15, %v1608_v51 }
 0x18f   : > { %1695 = vst.msk [vmem:[#allocation2 + $0xf] sm:$0xfe] %vm1691_vm0, %v1606_v58  ;;  %1502 = vrot.lane.b32.xlu1 %v3505_v0, %s3257_s11 }
 0x190   : > { %1500 = vrot.lane.b32.xlu0 %v3513_v2, %s3257_s11 }
 0x191   : > { %v1239_v59 = vpop.permute.xlu1 %1238  ;;  %v1237_v60 = vpop.permute.xlu0 %1236 }
 0x192   : > { %1331 = vst.msk [vmem:[#allocation2 + $0x27] sm:$0xff] %vm1326_vm9, %v1239_v59 }
 0x193   : > { %1330 = vst.msk [vmem:[#allocation2 + $0x1f] sm:$0xfe] %vm1324_vm10, %v1237_v60  ;;  %1125 = vrot.lane.b32.xlu1 %v3505_v0, %s3253_s28 }
 0x194   : > { %1123 = vrot.lane.b32.xlu0 %v3513_v2, %s3253_s28 }
 0x195   : > { %v856_v61 = vpop.permute.xlu1 %855  ;;  %v854_v62 = vpop.permute.xlu0 %853  ;;  %v1726_v1 = vld [vmem:[#allocation2 + $0x18] sm:$0xff] }
 0x196   : > { %v1725_v63 = vld [vmem:[#allocation2 + $0x10] sm:$0xff]  ;;  %942 = vst.msk [vmem:[#allocation2 + $0x37] sm:$0xff] %vm937_vm8, %v856_v61 }
 0x197   : > { %941 = vst.msk [vmem:[#allocation2 + $0x2f] sm:$0xfe] %vm935_vm11, %v854_v62  ;;  %3096 = vmatprep.mubr.msk.f32.mxu1 %vm629_vm2, %v1725_v63  ;;  %1623 = vrot.lane.b32.xlu1 %v3505_v0, %s3258_s19 }
 0x198   : > { %3097 = vmatmul.mubr.msk.f32.gmra.mxu1 %vm629_vm2, %v1726_v1  ;;  %1621 = vrot.lane.b32.xlu0 %v3513_v2, %s3258_s19 }
 0x199   : > { %v739_v3 = vpop.permute.xlu1 %738  ;;  %v737_v5 = vpop.permute.xlu0 %736 }
 0x19a   : > { %822 = vst.msk [vmem:[#allocation2 + $0x48] sm:$0xff] %vm814_vm5, %v739_v3  ;;  %821 = vst.msk [vmem:[#allocation2 + $0x40] sm:$0xff] %vm814_vm5, %v737_v5 }
 0x19b   : > { %750 = vrot.lane.b32.xlu1 %v3505_v0, %s3252_s27 }
 0x19c   : > { %748 = vrot.lane.b32.xlu0 %v3513_v2, %s3252_s27 }
 0x19d   : > { %v1369_v7 = vpop.permute.xlu1 %1368  ;;  %v1367_v9 = vpop.permute.xlu0 %1366 }
 0x19e   : > { %1455 = vst.msk [vmem:[#allocation2 + $0x29] sm:$0x7f] %vm1450_vm12, %v1369_v7 }
 0x19f   : > { %1454 = vst.msk [vmem:[#allocation2 + $0x21] sm:$0xff] %vm1448_vm13, %v1367_v9  ;;  %1254 = vrot.lane.b32.xlu1 %v3505_v0, %s3254_s29 }
 0x1a0   : > { %1252 = vrot.lane.b32.xlu0 %v3513_v2, %s3254_s29 }
 0x1a1   : > { %v984_v11 = vpop.permute.xlu1 %983  ;;  %v982_v12 = vpop.permute.xlu0 %981 }
 0x1a2   : > { %1074 = vst.msk [vmem:[#allocation2 + $0x39] sm:$0x7f] %vm1067_vm4, %v984_v11 }
 0x1a3   : > { %1073 = vst.msk [vmem:[#allocation2 + $0x31] sm:$0xff] %vm1065_vm6, %v982_v12  ;;  %871 = vrot.lane.b32.xlu1 %v3505_v0, %s3255_s30  ;;  %v3073_v0 = vpop.f32.mrf.mxu1 }
 0x1a4   : > { %869 = vrot.lane.b32.xlu0 %v3513_v2, %s3255_s30  ;;  %v3775_v20 = vmax.f32 %v3073_v0, 0.0 }
 0x1a5   : > { %v1491_v16 = vpop.permute.xlu1 %1490  ;;  %v1489_v17 = vpop.permute.xlu0 %1488 }
 0x1a6   : > { %1576 = vst.msk [vmem:[#allocation2 + $0x28] sm:$0xff] %vm1570_vm14, %v1491_v16  ;;  %1575 = vst.msk [vmem:[#allocation2 + $0x20] sm:$0xff] %vm1570_vm14, %v1489_v17  ;;  %v558_v21 = vpop.f32.mrf.mxu1 }
 0x1a7   : > { %1384 = vrot.lane.b32.xlu1 %v3545_v4, %s3256_s6  ;;  %689 = vst.msk [vmem:[#allocation2 + $0xd9] sm:$0x7f] %vm664_vm3, %v3775_v20  ;;  %v3783_v22 = vmax.f32 %v558_v21, 0.0 }
 0x1a8   : > { %1382 = vrot.lane.b32.xlu0 %v3553_v6, %s3256_s6  ;;  %v3076_v23 = vpop.f32.mrf.mxu1 }
 0x1a9   : > { %v1114_v2 = vpop.permute.xlu1 %1113  ;;  %v1112_v19 = vpop.permute.xlu0 %1111  ;;  %688 = vst.msk [vmem:[#allocation2 + $0xd1] sm:$0xff] %vm271_vm1, %v3783_v22  ;;  %v3789_v26 = vmax.f32 %v3076_v23, 0.0 }
 0x1aa   : > { %1203 = vst.msk [vmem:[#allocation2 + $0x38] sm:$0xff] %vm1195_vm7, %v1114_v2  ;;  %1202 = vst.msk [vmem:[#allocation2 + $0x30] sm:$0xff] %vm1195_vm7, %v1112_v19  ;;  %v568_v27 = vpop.f32.mrf.mxu1 }
 0x1ab   : > { %999 = vrot.lane.b32.xlu1 %v3545_v4, %s3251_s26  ;;  %691 = vst.msk [vmem:[#allocation2 + $0xe9] sm:$0x7f] %vm664_vm3, %v3789_v26  ;;  %v3797_v29 = vmax.f32 %v568_v27, 0.0 }
 0x1ac   : > { %997 = vrot.lane.b32.xlu0 %v3553_v6, %s3251_s26  ;;  %v3079_v31 = vpop.f32.mrf.mxu1 }
 0x1ad   : > { %v1612_v24 = vpop.permute.xlu1 %1611  ;;  %v1610_v25 = vpop.permute.xlu0 %1609  ;;  %690 = vst.msk [vmem:[#allocation2 + $0xe1] sm:$0xff] %vm271_vm1, %v3797_v29  ;;  %v3803_v34 = vmax.f32 %v3079_v31, 0.0 }
 0x1ae   : > { %1698 = vst.msk [vmem:[#allocation2 + $0x27] sm:$0xff] %vm1693_vm15, %v1612_v24  ;;  %v578_v35 = vpop.f32.mrf.mxu1 }
 0x1af   : > { %1697 = vst.msk [vmem:[#allocation2 + $0x1f] sm:$0xfe] %vm1691_vm0, %v1610_v25  ;;  %1506 = vrot.lane.b32.xlu1 %v3545_v4, %s3257_s11  ;;  %v3811_v36 = vmax.f32 %v578_v35, 0.0 }
 0x1b0   : > { %1504 = vrot.lane.b32.xlu0 %v3553_v6, %s3257_s11  ;;  %693 = vst.msk [vmem:[#allocation2 + $0xf9] sm:$0x7f] %vm664_vm3, %v3803_v34  ;;  %vm2309_vm3 = vcmask 64512  }
 0x1b1   : > { %v1243_v32 = vpop.permute.xlu1 %1242  ;;  %v1241_v33 = vpop.permute.xlu0 %1240  ;;  %692 = vst.msk [vmem:[#allocation2 + $0xf1] sm:$0xff] %vm271_vm1, %v3811_v36 }
 0x1b2   : > { %1333 = vst.msk [vmem:[#allocation2 + $0x37] sm:$0xff] %vm1326_vm9, %v1243_v32 }
 0x1b3   : > { %1332 = vst.msk [vmem:[#allocation2 + $0x2f] sm:$0xfe] %vm1324_vm10, %v1241_v33  ;;  %1129 = vrot.lane.b32.xlu1 %v3545_v4, %s3253_s28 }
 0x1b4   : > { %1127 = vrot.lane.b32.xlu0 %v3553_v6, %s3253_s28 }
 0x1b5   : > { %v860_v37 = vpop.permute.xlu1 %859  ;;  %v858_v38 = vpop.permute.xlu0 %857  ;;  %v1728_v40 = vld [vmem:[#allocation2 + $0x28] sm:$0xff] }
 0x1b6   : > { %v1727_v39 = vld [vmem:[#allocation2 + $0x20] sm:$0xff]  ;;  %944 = vst.msk [vmem:[#allocation2 + $0x47] sm:$0xff] %vm937_vm8, %v860_v37 }
 0x1b7   : > { %943 = vst.msk [vmem:[#allocation2 + $0x3f] sm:$0xfe] %vm935_vm11, %v858_v38  ;;  %3099 = vmatprep.mubr.msk.f32.mxu1 %vm629_vm2, %v1727_v39  ;;  %1627 = vrot.lane.b32.xlu1 %v3545_v4, %s3258_s19 }
 0x1b8   : > { %3100 = vmatmul.mubr.msk.f32.gmra.mxu1 %vm629_vm2, %v1728_v40  ;;  %1625 = vrot.lane.b32.xlu0 %v3553_v6, %s3258_s19 }
 0x1b9   : > { %v743_v41 = vpop.permute.xlu1 %742  ;;  %v741_v42 = vpop.permute.xlu0 %740 }
 0x1ba   : > { %824 = vst.msk [vmem:[#allocation2 + $0x58] sm:$0xff] %vm814_vm5, %v743_v41  ;;  %823 = vst.msk [vmem:[#allocation2 + $0x50] sm:$0xff] %vm814_vm5, %v741_v42 }
 0x1bb   : > { %754 = vrot.lane.b32.xlu1 %v3545_v4, %s3252_s27 }
 0x1bc   : > { %752 = vrot.lane.b32.xlu0 %v3553_v6, %s3252_s27 }
 0x1bd   : > { %v1373_v43 = vpop.permute.xlu1 %1372  ;;  %v1371_v44 = vpop.permute.xlu0 %1370 }
 0x1be   : > { %1457 = vst.msk [vmem:[#allocation2 + $0x39] sm:$0x7f] %vm1450_vm12, %v1373_v43 }
 0x1bf   : > { %1456 = vst.msk [vmem:[#allocation2 + $0x31] sm:$0xff] %vm1448_vm13, %v1371_v44  ;;  %1258 = vrot.lane.b32.xlu1 %v3545_v4, %s3254_s29 }
 0x1c0   : > { %1256 = vrot.lane.b32.xlu0 %v3553_v6, %s3254_s29 }
 0x1c1   : > { %v988_v45 = vpop.permute.xlu1 %987  ;;  %v986_v46 = vpop.permute.xlu0 %985 }
 0x1c2   : > { %1076 = vst.msk [vmem:[#allocation2 + $0x49] sm:$0x7f] %vm1067_vm4, %v988_v45 }
 0x1c3   : > { %1075 = vst.msk [vmem:[#allocation2 + $0x41] sm:$0xff] %vm1065_vm6, %v986_v46  ;;  %875 = vrot.lane.b32.xlu1 %v3545_v4, %s3255_s30 }
 0x1c4   : > { %873 = vrot.lane.b32.xlu0 %v3553_v6, %s3255_s30 }
 0x1c5   : > { %v1495_v48 = vpop.permute.xlu1 %1494  ;;  %v1493_v49 = vpop.permute.xlu0 %1492 }
 0x1c6   : > { %1578 = vst.msk [vmem:[#allocation2 + $0x38] sm:$0xff] %vm1570_vm14, %v1495_v48  ;;  %1577 = vst.msk [vmem:[#allocation2 + $0x30] sm:$0xff] %vm1570_vm14, %v1493_v49 }
 0x1c7   : > { %1388 = vrot.lane.b32.xlu1 %v3585_v8, %s3256_s6 }
 0x1c8   : > { %1386 = vrot.lane.b32.xlu0 %v3593_v10, %s3256_s6 }
 0x1c9   : > { %v1118_v50 = vpop.permute.xlu1 %1117  ;;  %v1116_v53 = vpop.permute.xlu0 %1115 }
 0x1ca   : > { %1205 = vst.msk [vmem:[#allocation2 + $0x48] sm:$0xff] %vm1195_vm7, %v1118_v50  ;;  %1204 = vst.msk [vmem:[#allocation2 + $0x40] sm:$0xff] %vm1195_vm7, %v1116_v53 }
 0x1cb   : > { %1003 = vrot.lane.b32.xlu1 %v3585_v8, %s3251_s26 }
 0x1cc   : > { %1001 = vrot.lane.b32.xlu0 %v3593_v10, %s3251_s26 }
 0x1cd   : > { %v1616_v4 = vpop.permute.xlu1 %1615  ;;  %v1614_v6 = vpop.permute.xlu0 %1613 }
 0x1ce   : > { %1700 = vst.msk [vmem:[#allocation2 + $0x37] sm:$0xff] %vm1693_vm15, %v1616_v4  ;;  %v4009_v4 = vpop.f32.mrf.mxu1 }
 0x1cf   : > { %1699 = vst.msk [vmem:[#allocation2 + $0x2f] sm:$0xfe] %vm1691_vm0, %v1614_v6  ;;  %1510 = vrot.lane.b32.xlu1 %v3585_v8, %s3257_s11 }
 0x1d0   : > { %1508 = vrot.lane.b32.xlu0 %v3593_v10, %s3257_s11 }
 0x1d1   : > { %v1247_v55 = vpop.permute.xlu1 %1246  ;;  %v1245_v56 = vpop.permute.xlu0 %1244 }
 0x1d2   : > { %1335 = vst.msk [vmem:[#allocation2 + $0x47] sm:$0xff] %vm1326_vm9, %v1247_v55 }
 0x1d3   : > { %1334 = vst.msk [vmem:[#allocation2 + $0x3f] sm:$0xfe] %vm1324_vm10, %v1245_v56  ;;  %1133 = vrot.lane.b32.xlu1 %v3585_v8, %s3253_s28 }
 0x1d4   : > { %1131 = vrot.lane.b32.xlu0 %v3593_v10, %s3253_s28 }
 0x1d5   : > { %v864_v47 = vpop.permute.xlu1 %863  ;;  %v862_v57 = vpop.permute.xlu0 %861  ;;  %v1730_v58 = vld [vmem:[#allocation2 + $0x38] sm:$0xff] }
 0x1d6   : > { %v1729_v51 = vld [vmem:[#allocation2 + $0x30] sm:$0xff]  ;;  %946 = vst.msk [vmem:[#allocation2 + $0x57] sm:$0xff] %vm937_vm8, %v864_v47 }
 0x1d7   : > { %945 = vst.msk [vmem:[#allocation2 + $0x4f] sm:$0xfe] %vm935_vm11, %v862_v57  ;;  %3102 = vmatprep.mubr.msk.f32.mxu1 %vm629_vm2, %v1729_v51  ;;  %1631 = vrot.lane.b32.xlu1 %v3585_v8, %s3258_s19  ;;  %v4018_v57 = vpop.f32.mrf.mxu1 }
 0x1d8   : > { %3103 = vmatmul.mubr.msk.f32.gmra.mxu1 %vm629_vm2, %v1730_v58  ;;  %1629 = vrot.lane.b32.xlu0 %v3593_v10, %s3258_s19 }
 0x1d9   : > { %v1377_v59 = vpop.permute.xlu1 %1376  ;;  %v1375_v60 = vpop.permute.xlu0 %1374 }
 0x1da   : > { %1459 = vst.msk [vmem:[#allocation2 + $0x49] sm:$0x7f] %vm1450_vm12, %v1377_v59 }
 0x1db   : > { %1458 = vst.msk [vmem:[#allocation2 + $0x41] sm:$0xff] %vm1448_vm13, %v1375_v60  ;;  %758 = vrot.lane.b32.xlu1 %v3585_v8, %s3252_s27 }
 0x1dc   : > { %756 = vrot.lane.b32.xlu0 %v3593_v10, %s3252_s27 }
 0x1dd   : > { %v992_v61 = vpop.permute.xlu1 %991  ;;  %v990_v62 = vpop.permute.xlu0 %989 }
 0x1de   : > { %1078 = vst.msk [vmem:[#allocation2 + $0x59] sm:$0x7f] %vm1067_vm4, %v992_v61 }
 0x1df   : > { %1077 = vst.msk [vmem:[#allocation2 + $0x51] sm:$0xff] %vm1065_vm6, %v990_v62  ;;  %1262 = vrot.lane.b32.xlu1 %v3585_v8, %s3254_s29 }
 0x1e0   : > { %1260 = vrot.lane.b32.xlu0 %v3593_v10, %s3254_s29 }
 0x1e1   : > { %v1499_v63 = vpop.permute.xlu1 %1498  ;;  %v1497_v1 = vpop.permute.xlu0 %1496 }
 0x1e2   : > { %1580 = vst.msk [vmem:[#allocation2 + $0x48] sm:$0xff] %vm1570_vm14, %v1499_v63  ;;  %1579 = vst.msk [vmem:[#allocation2 + $0x40] sm:$0xff] %vm1570_vm14, %v1497_v1 }
 0x1e3   : > { %879 = vrot.lane.b32.xlu1 %v3585_v8, %s3255_s30 }
 0x1e4   : > { %877 = vrot.lane.b32.xlu0 %v3593_v10, %s3255_s30 }
 0x1e5   : > { %v1122_v3 = vpop.permute.xlu1 %1121  ;;  %v1120_v5 = vpop.permute.xlu0 %1119 }
 0x1e6   : > { %1207 = vst.msk [vmem:[#allocation2 + $0x58] sm:$0xff] %vm1195_vm7, %v1122_v3  ;;  %1206 = vst.msk [vmem:[#allocation2 + $0x50] sm:$0xff] %vm1195_vm7, %v1120_v5 }
 0x1e7   : > { %1392 = vrot.lane.b32.xlu1 %v3639_v28, %s3256_s6 }
 0x1e8   : > { %1390 = vrot.lane.b32.xlu0 %v3649_v30, %s3256_s6 }
 0x1e9   : > { %v1620_v7 = vpop.permute.xlu1 %1619 }
 0x1ea   : > { %1702 = vst.msk [vmem:[#allocation2 + $0x47] sm:$0xff] %vm1693_vm15, %v1620_v7  ;;  %v1618_v9 = vpop.permute.xlu0 %1617 }
 0x1eb   : > { %1701 = vst.msk [vmem:[#allocation2 + $0x3f] sm:$0xfe] %vm1691_vm0, %v1618_v9  ;;  %1007 = vrot.lane.b32.xlu1 %v3639_v28, %s3251_s26 }
 0x1ec   : > { %1005 = vrot.lane.b32.xlu0 %v3649_v30, %s3251_s26 }
 0x1ed   : > { %v747_v8 = vpop.permute.xlu1 %746 }
 0x1ee   : > { %826 = vst.msk [vmem:[#allocation2 + $0x68] sm:$0xff] %vm814_vm5, %v747_v8  ;;  %v745_v10 = vpop.permute.xlu0 %744 }
 0x1ef   : > { %825 = vst.msk [vmem:[#allocation2 + $0x60] sm:$0xff] %vm814_vm5, %v745_v10  ;;  %1514 = vrot.lane.b32.xlu1 %v3639_v28, %s3257_s11 }
 0x1f0   : > { %1512 = vrot.lane.b32.xlu0 %v3649_v30, %s3257_s11 }
 0x1f1   : > { %v1251_v11 = vpop.permute.xlu1 %1250  ;;  %v1732_v12 = vld [vmem:[#allocation2 + $0x48] sm:$0xff] }
 0x1f2   : > { %1337 = vst.msk [vmem:[#allocation2 + $0x57] sm:$0xff] %vm1326_vm9, %v1251_v11  ;;  %v1249_v13 = vpop.permute.xlu0 %1248  ;;  %v1731_v15 = vld [vmem:[#allocation2 + $0x40] sm:$0xff] }
 0x1f3   : > { %1336 = vst.msk [vmem:[#allocation2 + $0x4f] sm:$0xfe] %vm1324_vm10, %v1249_v13  ;;  %3105 = vmatprep.mubr.msk.f32.mxu1 %vm629_vm2, %v1731_v15  ;;  %1137 = vrot.lane.b32.xlu1 %v3639_v28, %s3253_s28 }
 0x1f4   : > { %3106 = vmatmul.mubr.msk.f32.gmra.mxu1 %vm629_vm2, %v1732_v12  ;;  %1135 = vrot.lane.b32.xlu0 %v3649_v30, %s3253_s28 }
 0x1f5   : > { %v868_v16 = vpop.permute.xlu1 %867 }
 0x1f6   : > { %948 = vst.msk [vmem:[#allocation2 + $0x67] sm:$0xff] %vm937_vm8, %v868_v16  ;;  %v866_v17 = vpop.permute.xlu0 %865 }
 0x1f7   : > { %947 = vst.msk [vmem:[#allocation2 + $0x5f] sm:$0xfe] %vm935_vm11, %v866_v17  ;;  %1635 = vrot.lane.b32.xlu1 %v3639_v28, %s3258_s19 }
 0x1f8   : > { %1633 = vrot.lane.b32.xlu0 %v3649_v30, %s3258_s19 }
 0x1f9   : > { %v1381_v0 = vpop.permute.xlu1 %1380 }
 0x1fa   : > { %1461 = vst.msk [vmem:[#allocation2 + $0x59] sm:$0x7f] %vm1450_vm12, %v1381_v0  ;;  %v1379_v2 = vpop.permute.xlu0 %1378 }
 0x1fb   : > { %1460 = vst.msk [vmem:[#allocation2 + $0x51] sm:$0xff] %vm1448_vm13, %v1379_v2  ;;  %762 = vrot.lane.b32.xlu1 %v3639_v28, %s3252_s27 }
 0x1fc   : > { %760 = vrot.lane.b32.xlu0 %v3649_v30, %s3252_s27 }
 0x1fd   : > { %v996_v19 = vpop.permute.xlu1 %995 }
 0x1fe   : > { %1080 = vst.msk [vmem:[#allocation2 + $0x69] sm:$0x7f] %vm1067_vm4, %v996_v19  ;;  %v994_v21 = vpop.permute.xlu0 %993 }
 0x1ff   : > { %1079 = vst.msk [vmem:[#allocation2 + $0x61] sm:$0xff] %vm1065_vm6, %v994_v21  ;;  %1266 = vrot.lane.b32.xlu1 %v3639_v28, %s3254_s29 }
 0x200   : > { %1264 = vrot.lane.b32.xlu0 %v3649_v30, %s3254_s29 }
 0x201   : > { %v1503_v23 = vpop.permute.xlu1 %1502 }
 0x202   : > { %1582 = vst.msk [vmem:[#allocation2 + $0x58] sm:$0xff] %vm1570_vm14, %v1503_v23  ;;  %v1501_v24 = vpop.permute.xlu0 %1500 }
 0x203   : > { %1581 = vst.msk [vmem:[#allocation2 + $0x50] sm:$0xff] %vm1570_vm14, %v1501_v24  ;;  %883 = vrot.lane.b32.xlu1 %v3639_v28, %s3255_s30 }
 0x204   : > { %881 = vrot.lane.b32.xlu0 %v3649_v30, %s3255_s30 }
 0x205   : > { %v1126_v25 = vpop.permute.xlu1 %1125 }
 0x206   : > { %1209 = vst.msk [vmem:[#allocation2 + $0x68] sm:$0xff] %vm1195_vm7, %v1126_v25  ;;  %v1124_v27 = vpop.permute.xlu0 %1123 }
 0x207   : > { %1208 = vst.msk [vmem:[#allocation2 + $0x60] sm:$0xff] %vm1195_vm7, %v1124_v27  ;;  %1396 = vrot.lane.b32.xlu1 %v3697_v52, %s3256_s6 }
 0x208   : > { %1394 = vrot.lane.b32.xlu0 %v3707_v54, %s3256_s6 }
 0x209   : > { %v1624_v31 = vpop.permute.xlu1 %1623 }
 0x20a   : > { %1704 = vst.msk [vmem:[#allocation2 + $0x57] sm:$0xff] %vm1693_vm15, %v1624_v31  ;;  %v1622_v32 = vpop.permute.xlu0 %1621 }
 0x20b   : > { %1703 = vst.msk [vmem:[#allocation2 + $0x4f] sm:$0xfe] %vm1691_vm0, %v1622_v32  ;;  %1011 = vrot.lane.b32.xlu1 %v3697_v52, %s3251_s26 }
 0x20c   : > { %1009 = vrot.lane.b32.xlu0 %v3707_v54, %s3251_s26 }
 0x20d   : > { %v751_v28 = vpop.permute.xlu1 %750 }
 0x20e   : > { %828 = vst.msk [vmem:[#allocation2 + $0x78] sm:$0xff] %vm814_vm5, %v751_v28  ;;  %v749_v30 = vpop.permute.xlu0 %748 }
 0x20f   : > { %827 = vst.msk [vmem:[#allocation2 + $0x70] sm:$0xff] %vm814_vm5, %v749_v30  ;;  %1518 = vrot.lane.b32.xlu1 %v3697_v52, %s3257_s11 }
 0x210   : > { %1516 = vrot.lane.b32.xlu0 %v3707_v54, %s3257_s11 }
 0x211   : > { %v1255_v33 = vpop.permute.xlu1 %1254  ;;  %v1734_v35 = vld [vmem:[#allocation2 + $0x58] sm:$0xff] }
 0x212   : > { %1339 = vst.msk [vmem:[#allocation2 + $0x67] sm:$0xff] %vm1326_vm9, %v1255_v33  ;;  %v1253_v37 = vpop.permute.xlu0 %1252  ;;  %v1733_v38 = vld [vmem:[#allocation2 + $0x50] sm:$0xff] }
 0x213   : > { %1338 = vst.msk [vmem:[#allocation2 + $0x5f] sm:$0xfe] %vm1324_vm10, %v1253_v37  ;;  %3108 = vmatprep.mubr.msk.f32.mxu1 %vm629_vm2, %v1733_v38  ;;  %1141 = vrot.lane.b32.xlu1 %v3697_v52, %s3253_s28 }
 0x214   : > { %3109 = vmatmul.mubr.msk.f32.gmra.mxu1 %vm629_vm2, %v1734_v35  ;;  %1139 = vrot.lane.b32.xlu0 %v3707_v54, %s3253_s28 }
 0x215   : > { %v872_v39 = vpop.permute.xlu1 %871 }
 0x216   : > { %950 = vst.msk [vmem:[#allocation2 + $0x77] sm:$0xff] %vm937_vm8, %v872_v39  ;;  %v870_v40 = vpop.permute.xlu0 %869 }
 0x217   : > { %949 = vst.msk [vmem:[#allocation2 + $0x6f] sm:$0xfe] %vm935_vm11, %v870_v40  ;;  %1639 = vrot.lane.b32.xlu1 %v3697_v52, %s3258_s19 }
 0x218   : > { %1637 = vrot.lane.b32.xlu0 %v3707_v54, %s3258_s19 }
 0x219   : > { %v1385_v41 = vpop.permute.xlu1 %1384 }
 0x21a   : > { %1463 = vst.msk [vmem:[#allocation2 + $0x69] sm:$0x7f] %vm1450_vm12, %v1385_v41  ;;  %v1383_v42 = vpop.permute.xlu0 %1382 }
 0x21b   : > { %1462 = vst.msk [vmem:[#allocation2 + $0x61] sm:$0xff] %vm1448_vm13, %v1383_v42  ;;  %766 = vrot.lane.b32.xlu1 %v3697_v52, %s3252_s27 }
 0x21c   : > { %764 = vrot.lane.b32.xlu0 %v3707_v54, %s3252_s27 }
 0x21d   : > { %v1000_v43 = vpop.permute.xlu1 %999 }
 0x21e   : > { %1082 = vst.msk [vmem:[#allocation2 + $0x79] sm:$0x7f] %vm1067_vm4, %v1000_v43  ;;  %v998_v44 = vpop.permute.xlu0 %997 }
 0x21f   : > { %1081 = vst.msk [vmem:[#allocation2 + $0x71] sm:$0xff] %vm1065_vm6, %v998_v44  ;;  %1270 = vrot.lane.b32.xlu1 %v3697_v52, %s3254_s29 }
 0x220   : > { %1268 = vrot.lane.b32.xlu0 %v3707_v54, %s3254_s29 }
 0x221   : > { %v1507_v45 = vpop.permute.xlu1 %1506 }
 0x222   : > { %1584 = vst.msk [vmem:[#allocation2 + $0x68] sm:$0xff] %vm1570_vm14, %v1507_v45  ;;  %v1505_v46 = vpop.permute.xlu0 %1504 }
 0x223   : > { %1583 = vst.msk [vmem:[#allocation2 + $0x60] sm:$0xff] %vm1570_vm14, %v1505_v46  ;;  %887 = vrot.lane.b32.xlu1 %v3697_v52, %s3255_s30 }
 0x224   : > { %885 = vrot.lane.b32.xlu0 %v3707_v54, %s3255_s30 }
 0x225   : > { %v1130_v48 = vpop.permute.xlu1 %1129 }
 0x226   : > { %1211 = vst.msk [vmem:[#allocation2 + $0x78] sm:$0xff] %vm1195_vm7, %v1130_v48  ;;  %v1128_v49 = vpop.permute.xlu0 %1127 }
 0x227   : > { %1210 = vst.msk [vmem:[#allocation2 + $0x70] sm:$0xff] %vm1195_vm7, %v1128_v49  ;;  %1400 = vrot.lane.b32.xlu1 %v3759_v14, %s3256_s6 }
 0x228   : > { %1398 = vrot.lane.b32.xlu0 %v3765_v18, %s3256_s6 }
 0x229   : > { %v1628_v50 = vpop.permute.xlu1 %1627 }
 0x22a   : > { %1706 = vst.msk [vmem:[#allocation2 + $0x67] sm:$0xff] %vm1693_vm15, %v1628_v50  ;;  %v1626_v53 = vpop.permute.xlu0 %1625 }
 0x22b   : > { %1705 = vst.msk [vmem:[#allocation2 + $0x5f] sm:$0xfe] %vm1691_vm0, %v1626_v53  ;;  %1015 = vrot.lane.b32.xlu1 %v3759_v14, %s3251_s26 }
 0x22c   : > { %1013 = vrot.lane.b32.xlu0 %v3765_v18, %s3251_s26 }
 0x22d   : > { %v755_v52 = vpop.permute.xlu1 %754 }
 0x22e   : > { %830 = vst.msk [vmem:[#allocation2 + $0x88] sm:$0xff] %vm814_vm5, %v755_v52  ;;  %v753_v54 = vpop.permute.xlu0 %752 }
 0x22f   : > { %829 = vst.msk [vmem:[#allocation2 + $0x80] sm:$0xff] %vm814_vm5, %v753_v54  ;;  %1522 = vrot.lane.b32.xlu1 %v3759_v14, %s3257_s11 }
 0x230   : > { %1520 = vrot.lane.b32.xlu0 %v3765_v18, %s3257_s11 }
 0x231   : > { %v1259_v6 = vpop.permute.xlu1 %1258  ;;  %v1736_v55 = vld [vmem:[#allocation2 + $0x68] sm:$0xff] }
 0x232   : > { %1341 = vst.msk [vmem:[#allocation2 + $0x77] sm:$0xff] %vm1326_vm9, %v1259_v6  ;;  %v1257_v56 = vpop.permute.xlu0 %1256  ;;  %v1735_v47 = vld [vmem:[#allocation2 + $0x60] sm:$0xff] }
 0x233   : > { %1340 = vst.msk [vmem:[#allocation2 + $0x6f] sm:$0xfe] %vm1324_vm10, %v1257_v56  ;;  %3111 = vmatprep.mubr.msk.f32.mxu1 %vm629_vm2, %v1735_v47  ;;  %1145 = vrot.lane.b32.xlu1 %v3759_v14, %s3253_s28 }
 0x234   : > { %1143 = vrot.lane.b32.xlu0 %v3765_v18, %s3253_s28  ;;  %3112 = vmatmul.mubr.msk.f32.gmra.mxu1 %vm629_vm2, %v1736_v55 }
 0x235   : > { %v876_v51 = vpop.permute.xlu1 %875 }
 0x236   : > { %952 = vst.msk [vmem:[#allocation2 + $0x87] sm:$0xff] %vm937_vm8, %v876_v51  ;;  %v874_v58 = vpop.permute.xlu0 %873 }
 0x237   : > { %951 = vst.msk [vmem:[#allocation2 + $0x7f] sm:$0xfe] %vm935_vm11, %v874_v58  ;;  %1643 = vrot.lane.b32.xlu1 %v3759_v14, %s3258_s19 }
 0x238   : > { %v3095_v59 = vpop.f32.mrf.mxu1  ;;  %1641 = vrot.lane.b32.xlu0 %v3765_v18, %s3258_s19 }
 0x239   : > { %v2085_v60 = vmax.f32 %v3095_v59, 0.0  ;;  %v1389_v62 = vpop.permute.xlu1 %1388 }
 0x23a   : > { %v1925_v61 = vpop.f32.mrf.mxu1  ;;  %1465 = vst.msk [vmem:[#allocation2 + $0x79] sm:$0x7f] %vm1450_vm12, %v1389_v62  ;;  %v1387_v1 = vpop.permute.xlu0 %1386 }
 0x23b   : > { %2117 = vst.msk [vmem:[#allocation3 + $0x8] sm:$0xff] %vm271_vm1, %v2085_v60  ;;  %v2084_v63 = vmax.f32 %v1925_v61, 0.0  ;;  %770 = vrot.lane.b32.xlu1 %v3759_v14, %s3252_s27 }
 0x23c   : > { %1464 = vst.msk [vmem:[#allocation2 + $0x71] sm:$0xff] %vm1448_vm13, %v1387_v1  ;;  %768 = vrot.lane.b32.xlu0 %v3765_v18, %s3252_s27 }
 0x23d   : > { %2116 = vst.msk [vmem:[#allocation3] sm:$0xff] %vm271_vm1, %v2084_v63  ;;  %v1004_v3 = vpop.permute.xlu1 %1003 }
 0x23e   : > { %1084 = vst.msk [vmem:[#allocation2 + $0x89] sm:$0x7f] %vm1067_vm4, %v1004_v3  ;;  %v1002_v5 = vpop.permute.xlu0 %1001 }
 0x23f   : > { %1083 = vst.msk [vmem:[#allocation2 + $0x81] sm:$0xff] %vm1065_vm6, %v1002_v5  ;;  %1274 = vrot.lane.b32.xlu1 %v3759_v14, %s3254_s29 }
 0x240   : > { %1272 = vrot.lane.b32.xlu0 %v3765_v18, %s3254_s29 }
 0x241   : > { %v1511_v7 = vpop.permute.xlu1 %1510 }
 0x242   : > { %1586 = vst.msk [vmem:[#allocation2 + $0x78] sm:$0xff] %vm1570_vm14, %v1511_v7  ;;  %v1509_v9 = vpop.permute.xlu0 %1508 }
 0x243   : > { %1585 = vst.msk [vmem:[#allocation2 + $0x70] sm:$0xff] %vm1570_vm14, %v1509_v9  ;;  %891 = vrot.lane.b32.xlu1 %v3759_v14, %s3255_s30 }
 0x244   : > { %889 = vrot.lane.b32.xlu0 %v3765_v18, %s3255_s30 }
 0x245   : > { %v1134_v8 = vpop.permute.xlu1 %1133 }
 0x246   : > { %1213 = vst.msk [vmem:[#allocation2 + $0x88] sm:$0xff] %vm1195_vm7, %v1134_v8  ;;  %v1132_v10 = vpop.permute.xlu0 %1131 }
 0x247   : > { %1212 = vst.msk [vmem:[#allocation2 + $0x80] sm:$0xff] %vm1195_vm7, %v1132_v10  ;;  %1404 = vrot.lane.b32.xlu1 %v3775_v20, %s3256_s6 }
 0x248   : > { %1402 = vrot.lane.b32.xlu0 %v3783_v22, %s3256_s6 }
 0x249   : > { %v1632_v11 = vpop.permute.xlu1 %1631 }
 0x24a   : > { %1708 = vst.msk [vmem:[#allocation2 + $0x77] sm:$0xff] %vm1693_vm15, %v1632_v11  ;;  %v1630_v12 = vpop.permute.xlu0 %1629  ;;  %v628_v11 = vmax.f32 %v4009_v4, 0.0 }
 0x24b   : > { %1707 = vst.msk [vmem:[#allocation2 + $0x6f] sm:$0xfe] %vm1691_vm0, %v1630_v12  ;;  %1019 = vrot.lane.b32.xlu1 %v3775_v20, %s3251_s26 }
 0x24c   : > { %1017 = vrot.lane.b32.xlu0 %v3783_v22, %s3251_s26 }
 0x24d   : > { %v759_v14 = vpop.permute.xlu1 %758 }
 0x24e   : > { %832 = vst.msk [vmem:[#allocation2 + $0x98] sm:$0xff] %vm814_vm5, %v759_v14  ;;  %v757_v18 = vpop.permute.xlu0 %756  ;;  %v627_v14 = vmax.f32 %v4018_v57, 0.0 }
 0x24f   : > { %831 = vst.msk [vmem:[#allocation2 + $0x90] sm:$0xff] %vm814_vm5, %v757_v18  ;;  %1526 = vrot.lane.b32.xlu1 %v3775_v20, %s3257_s11 }
 0x250   : > { %1524 = vrot.lane.b32.xlu0 %v3783_v22, %s3257_s11 }
 0x251   : > { %v1263_v13 = vpop.permute.xlu1 %1262  ;;  %v1738_v15 = vld [vmem:[#allocation2 + $0x78] sm:$0xff] }
 0x252   : > { %1343 = vst.msk [vmem:[#allocation2 + $0x87] sm:$0xff] %vm1326_vm9, %v1263_v13  ;;  %v1261_v16 = vpop.permute.xlu0 %1260  ;;  %v1737_v17 = vld [vmem:[#allocation2 + $0x70] sm:$0xff] }
 0x253   : > { %1342 = vst.msk [vmem:[#allocation2 + $0x7f] sm:$0xfe] %vm1324_vm10, %v1261_v16  ;;  %3114 = vmatprep.mubr.msk.f32.mxu1 %vm629_vm2, %v1737_v17  ;;  %1149 = vrot.lane.b32.xlu1 %v3775_v20, %s3253_s28 }
 0x254   : > { %1147 = vrot.lane.b32.xlu0 %v3783_v22, %s3253_s28  ;;  %3115 = vmatmul.mubr.msk.f32.gmra.mxu1 %vm629_vm2, %v1738_v15 }
 0x255   : > { %v880_v0 = vpop.permute.xlu1 %879 }
 0x256   : > { %954 = vst.msk [vmem:[#allocation2 + $0x97] sm:$0xff] %vm937_vm8, %v880_v0  ;;  %v878_v2 = vpop.permute.xlu0 %877 }
 0x257   : > { %953 = vst.msk [vmem:[#allocation2 + $0x8f] sm:$0xfe] %vm935_vm11, %v878_v2  ;;  %1647 = vrot.lane.b32.xlu1 %v3775_v20, %s3258_s19 }
 0x258   : > { %v3098_v19 = vpop.f32.mrf.mxu1  ;;  %1645 = vrot.lane.b32.xlu0 %v3783_v22, %s3258_s19 }
 0x259   : > { %v2087_v21 = vmax.f32 %v3098_v19, 0.0  ;;  %v1393_v24 = vpop.permute.xlu1 %1392 }
 0x25a   : > { %v1935_v23 = vpop.f32.mrf.mxu1  ;;  %1467 = vst.msk [vmem:[#allocation2 + $0x89] sm:$0x7f] %vm1450_vm12, %v1393_v24  ;;  %v1391_v27 = vpop.permute.xlu0 %1390 }
 0x25b   : > { %2119 = vst.msk [vmem:[#allocation3 + $0x18] sm:$0xff] %vm271_vm1, %v2087_v21  ;;  %v2086_v25 = vmax.f32 %v1935_v23, 0.0  ;;  %774 = vrot.lane.b32.xlu1 %v3775_v20, %s3252_s27 }
 0x25c   : > { %1466 = vst.msk [vmem:[#allocation2 + $0x81] sm:$0xff] %vm1448_vm13, %v1391_v27  ;;  %772 = vrot.lane.b32.xlu0 %v3783_v22, %s3252_s27 }
 0x25d   : > { %2118 = vst.msk [vmem:[#allocation3 + $0x10] sm:$0xff] %vm271_vm1, %v2086_v25  ;;  %v1008_v31 = vpop.permute.xlu1 %1007 }
 0x25e   : > { %1086 = vst.msk [vmem:[#allocation2 + $0x99] sm:$0x7f] %vm1067_vm4, %v1008_v31  ;;  %v1006_v32 = vpop.permute.xlu0 %1005 }
 0x25f   : > { %1085 = vst.msk [vmem:[#allocation2 + $0x91] sm:$0xff] %vm1065_vm6, %v1006_v32  ;;  %1278 = vrot.lane.b32.xlu1 %v3775_v20, %s3254_s29 }
 0x260   : > { %1276 = vrot.lane.b32.xlu0 %v3783_v22, %s3254_s29 }
 0x261   : > { %v1515_v28 = vpop.permute.xlu1 %1514 }
 0x262   : > { %1588 = vst.msk [vmem:[#allocation2 + $0x88] sm:$0xff] %vm1570_vm14, %v1515_v28  ;;  %v1513_v30 = vpop.permute.xlu0 %1512 }
 0x263   : > { %1587 = vst.msk [vmem:[#allocation2 + $0x80] sm:$0xff] %vm1570_vm14, %v1513_v30  ;;  %895 = vrot.lane.b32.xlu1 %v3775_v20, %s3255_s30 }
 0x264   : > { %893 = vrot.lane.b32.xlu0 %v3783_v22, %s3255_s30 }
 0x265   : > { %v1138_v33 = vpop.permute.xlu1 %1137 }
 0x266   : > { %1215 = vst.msk [vmem:[#allocation2 + $0x98] sm:$0xff] %vm1195_vm7, %v1138_v33  ;;  %v1136_v35 = vpop.permute.xlu0 %1135 }
 0x267   : > { %1214 = vst.msk [vmem:[#allocation2 + $0x90] sm:$0xff] %vm1195_vm7, %v1136_v35  ;;  %1408 = vrot.lane.b32.xlu1 %v3789_v26, %s3256_s6 }
 0x268   : > { %1406 = vrot.lane.b32.xlu0 %v3797_v29, %s3256_s6 }
 0x269   : > { %v1636_v37 = vpop.permute.xlu1 %1635 }
 0x26a   : > { %1710 = vst.msk [vmem:[#allocation2 + $0x87] sm:$0xff] %vm1693_vm15, %v1636_v37  ;;  %v1634_v38 = vpop.permute.xlu0 %1633  ;;  %v3210_v37 = vld [vmem:[%s3310_s25 + $0x8] sm:$0xff] }
 0x26b   : > { %1709 = vst.msk [vmem:[#allocation2 + $0x7f] sm:$0xfe] %vm1691_vm0, %v1634_v38  ;;  %1023 = vrot.lane.b32.xlu1 %v3789_v26, %s3251_s26  ;;  %v3211_v38 = vld [vmem:[%s3310_s25] sm:$0xff] }
 0x26c   : > { %1021 = vrot.lane.b32.xlu0 %v3797_v29, %s3251_s26 }
 0x26d   : > { %v763_v20 = vpop.permute.xlu1 %762 }
 0x26e   : > { %834 = vst.msk [vmem:[#allocation2 + $0xa8] sm:$0xff] %vm814_vm5, %v763_v20  ;;  %v761_v22 = vpop.permute.xlu0 %760 }
 0x26f   : > { %833 = vst.msk [vmem:[#allocation2 + $0xa0] sm:$0xff] %vm814_vm5, %v761_v22  ;;  %1530 = vrot.lane.b32.xlu1 %v3789_v26, %s3257_s11 }
 0x270   : > { %1528 = vrot.lane.b32.xlu0 %v3797_v29, %s3257_s11 }
 0x271   : > { %v1267_v39 = vpop.permute.xlu1 %1266  ;;  %v1740_v40 = vld [vmem:[#allocation2 + $0x88] sm:$0xff] }
 0x272   : > { %1345 = vst.msk [vmem:[#allocation2 + $0x97] sm:$0xff] %vm1326_vm9, %v1267_v39  ;;  %v1265_v41 = vpop.permute.xlu0 %1264  ;;  %v1739_v42 = vld [vmem:[#allocation2 + $0x80] sm:$0xff]  ;;  %v3212_v39 = vld [vmem:[%s3310_s25 + $0x18] sm:$0xff] }
 0x273   : > { %1344 = vst.msk [vmem:[#allocation2 + $0x8f] sm:$0xfe] %vm1324_vm10, %v1265_v41  ;;  %3117 = vmatprep.mubr.msk.f32.mxu1 %vm629_vm2, %v1739_v42  ;;  %1153 = vrot.lane.b32.xlu1 %v3789_v26, %s3253_s28 }
 0x274   : > { %1151 = vrot.lane.b32.xlu0 %v3797_v29, %s3253_s28  ;;  %3118 = vmatmul.mubr.msk.f32.gmra.mxu1 %vm629_vm2, %v1740_v40  ;;  %v3213_v40 = vld [vmem:[%s3310_s25 + $0x10] sm:$0xff] }
 0x275   : > { %v884_v43 = vpop.permute.xlu1 %883 }
 0x276   : > { %956 = vst.msk [vmem:[#allocation2 + $0xa7] sm:$0xff] %vm937_vm8, %v884_v43  ;;  %v882_v44 = vpop.permute.xlu0 %881  ;;  %v3214_v43 = vld [vmem:[%s3310_s25 + $0x28] sm:$0xff] }
 0x277   : > { %955 = vst.msk [vmem:[#allocation2 + $0x9f] sm:$0xfe] %vm935_vm11, %v882_v44  ;;  %1651 = vrot.lane.b32.xlu1 %v3789_v26, %s3258_s19  ;;  %v3215_v44 = vld [vmem:[%s3310_s25 + $0x20] sm:$0xff] }
 0x278   : > { %v3101_v45 = vpop.f32.mrf.mxu1  ;;  %1649 = vrot.lane.b32.xlu0 %v3797_v29, %s3258_s19 }
 0x279   : > { %v2089_v46 = vmax.f32 %v3101_v45, 0.0  ;;  %v1397_v49 = vpop.permute.xlu1 %1396 }
 0x27a   : > { %v1945_v48 = vpop.f32.mrf.mxu1  ;;  %1469 = vst.msk [vmem:[#allocation2 + $0x99] sm:$0x7f] %vm1450_vm12, %v1397_v49  ;;  %v1395_v53 = vpop.permute.xlu0 %1394  ;;  %v3217_v49 = vld [vmem:[%s3310_s25 + $0x30] sm:$0xff] }
 0x27b   : > { %2121 = vst.msk [vmem:[#allocation3 + $0x28] sm:$0xff] %vm271_vm1, %v2089_v46  ;;  %v2088_v50 = vmax.f32 %v1945_v48, 0.0  ;;  %778 = vrot.lane.b32.xlu1 %v3789_v26, %s3252_s27  ;;  %v3216_v48 = vld [vmem:[%s3310_s25 + $0x38] sm:$0xff] }
 0x27c   : > { %1468 = vst.msk [vmem:[#allocation2 + $0x91] sm:$0xff] %vm1448_vm13, %v1395_v53  ;;  %776 = vrot.lane.b32.xlu0 %v3797_v29, %s3252_s27 }
 0x27d   : > { %2120 = vst.msk [vmem:[#allocation3 + $0x20] sm:$0xff] %vm271_vm1, %v2088_v50  ;;  %v1012_v52 = vpop.permute.xlu1 %1011 }
 0x27e   : > { %1088 = vst.msk [vmem:[#allocation2 + $0xa9] sm:$0x7f] %vm1067_vm4, %v1012_v52  ;;  %v1010_v54 = vpop.permute.xlu0 %1009  ;;  %v3218_v52 = vld [vmem:[%s3310_s25 + $0x48] sm:$0xff] }
 0x27f   : > { %1087 = vst.msk [vmem:[#allocation2 + $0xa1] sm:$0xff] %vm1065_vm6, %v1010_v54  ;;  %1282 = vrot.lane.b32.xlu1 %v3789_v26, %s3254_s29  ;;  %v3219_v54 = vld [vmem:[%s3310_s25 + $0x40] sm:$0xff] }
 0x280   : > { %1280 = vrot.lane.b32.xlu0 %v3797_v29, %s3254_s29 }
 0x281   : > { %v1519_v6 = vpop.permute.xlu1 %1518 }
 0x282   : > { %1590 = vst.msk [vmem:[#allocation2 + $0x98] sm:$0xff] %vm1570_vm14, %v1519_v6  ;;  %v1517_v55 = vpop.permute.xlu0 %1516 }
 0x283   : > { %1589 = vst.msk [vmem:[#allocation2 + $0x90] sm:$0xff] %vm1570_vm14, %v1517_v55  ;;  %899 = vrot.lane.b32.xlu1 %v3789_v26, %s3255_s30 }
 0x284   : > { %897 = vrot.lane.b32.xlu0 %v3797_v29, %s3255_s30 }
 0x285   : > { %v1142_v56 = vpop.permute.xlu1 %1141 }
 0x286   : > { %1217 = vst.msk [vmem:[#allocation2 + $0xa8] sm:$0xff] %vm1195_vm7, %v1142_v56  ;;  %v1140_v47 = vpop.permute.xlu0 %1139 }
 0x287   : > { %1216 = vst.msk [vmem:[#allocation2 + $0xa0] sm:$0xff] %vm1195_vm7, %v1140_v47  ;;  %1412 = vrot.lane.b32.xlu1 %v3803_v34, %s3256_s6 }
 0x288   : > { %1410 = vrot.lane.b32.xlu0 %v3811_v36, %s3256_s6 }
 0x289   : > { %v1640_v51 = vpop.permute.xlu1 %1639 }
 0x28a   : > { %1712 = vst.msk [vmem:[#allocation2 + $0x97] sm:$0xff] %vm1693_vm15, %v1640_v51  ;;  %v1638_v58 = vpop.permute.xlu0 %1637  ;;  %v3220_v51 = vld [vmem:[%s3310_s25 + $0x58] sm:$0xff] }
 0x28b   : > { %1711 = vst.msk [vmem:[#allocation2 + $0x8f] sm:$0xfe] %vm1691_vm0, %v1638_v58  ;;  %1027 = vrot.lane.b32.xlu1 %v3803_v34, %s3251_s26 }
 0x28c   : > { %1025 = vrot.lane.b32.xlu0 %v3811_v36, %s3251_s26 }
 0x28d   : > { %v767_v26 = vpop.permute.xlu1 %766 }
 0x28e   : > { %836 = vst.msk [vmem:[#allocation2 + $0xb8] sm:$0xff] %vm814_vm5, %v767_v26  ;;  %v765_v29 = vpop.permute.xlu0 %764  ;;  %v3221_v26 = vld [vmem:[%s3310_s25 + $0x50] sm:$0xff] }
 0x28f   : > { %835 = vst.msk [vmem:[#allocation2 + $0xb0] sm:$0xff] %vm814_vm5, %v765_v29  ;;  %1534 = vrot.lane.b32.xlu1 %v3803_v34, %s3257_s11 }
 0x290   : > { %1532 = vrot.lane.b32.xlu0 %v3811_v36, %s3257_s11 }
 0x291   : > { %v1271_v59 = vpop.permute.xlu1 %1270  ;;  %v1742_v60 = vld [vmem:[#allocation2 + $0x98] sm:$0xff] }
 0x292   : > { %1347 = vst.msk [vmem:[#allocation2 + $0xa7] sm:$0xff] %vm1326_vm9, %v1271_v59  ;;  %v1269_v61 = vpop.permute.xlu0 %1268  ;;  %v1741_v62 = vld [vmem:[#allocation2 + $0x90] sm:$0xff] }
 0x293   : > { %1346 = vst.msk [vmem:[#allocation2 + $0x9f] sm:$0xfe] %vm1324_vm10, %v1269_v61  ;;  %3120 = vmatprep.mubr.msk.f32.mxu1 %vm629_vm2, %v1741_v62  ;;  %1157 = vrot.lane.b32.xlu1 %v3803_v34, %s3253_s28 }
 0x294   : > { %1155 = vrot.lane.b32.xlu0 %v3811_v36, %s3253_s28  ;;  %3121 = vmatmul.mubr.msk.f32.gmra.mxu1 %vm629_vm2, %v1742_v60 }
 0x295   : > { %v888_v63 = vpop.permute.xlu1 %887 }
 0x296   : > { %958 = vst.msk [vmem:[#allocation2 + $0xb7] sm:$0xff] %vm937_vm8, %v888_v63  ;;  %v886_v1 = vpop.permute.xlu0 %885  ;;  %v3222_v63 = vld [vmem:[%s3310_s25 + $0x68] sm:$0xff] }
 0x297   : > { %957 = vst.msk [vmem:[#allocation2 + $0xaf] sm:$0xfe] %vm935_vm11, %v886_v1  ;;  %1655 = vrot.lane.b32.xlu1 %v3803_v34, %s3258_s19  ;;  %v3223_v1 = vld [vmem:[%s3310_s25 + $0x60] sm:$0xff] }
 0x298   : > { %v3104_v3 = vpop.f32.mrf.mxu1  ;;  %1653 = vrot.lane.b32.xlu0 %v3811_v36, %s3258_s19 }
 0x299   : > { %v2091_v5 = vmax.f32 %v3104_v3, 0.0  ;;  %v1401_v9 = vpop.permute.xlu1 %1400 }
 0x29a   : > { %v1955_v7 = vpop.f32.mrf.mxu1  ;;  %1471 = vst.msk [vmem:[#allocation2 + $0xa9] sm:$0x7f] %vm1450_vm12, %v1401_v9  ;;  %v1399_v10 = vpop.permute.xlu0 %1398  ;;  %v3225_v9 = vld [vmem:[%s3310_s25 + $0x70] sm:$0xff] }
 0x29b   : > { %2123 = vst.msk [vmem:[#allocation3 + $0x38] sm:$0xff] %vm271_vm1, %v2091_v5  ;;  %v2090_v8 = vmax.f32 %v1955_v7, 0.0  ;;  %1286 = vrot.lane.b32.xlu1 %v3803_v34, %s3254_s29  ;;  %v3224_v7 = vld [vmem:[%s3310_s25 + $0x78] sm:$0xff] }
 0x29c   : > { %1470 = vst.msk [vmem:[#allocation2 + $0xa1] sm:$0xff] %vm1448_vm13, %v1399_v10  ;;  %1284 = vrot.lane.b32.xlu0 %v3811_v36, %s3254_s29 }
 0x29d   : > { %2122 = vst.msk [vmem:[#allocation3 + $0x30] sm:$0xff] %vm271_vm1, %v2090_v8  ;;  %v1016_v12 = vpop.permute.xlu1 %1015 }
 0x29e   : > { %1090 = vst.msk [vmem:[#allocation2 + $0xb9] sm:$0x7f] %vm1067_vm4, %v1016_v12  ;;  %v1014_v18 = vpop.permute.xlu0 %1013  ;;  %v3227_v12 = vld [vmem:[%s3310_s25 + $0x80] sm:$0xff] }
 0x29f   : > { %1089 = vst.msk [vmem:[#allocation2 + $0xb1] sm:$0xff] %vm1065_vm6, %v1014_v18  ;;  %1416 = vrot.lane.b32.xlu1 %v628_v11, %s3256_s6 }
 0x2a0   : > { %1414 = vrot.lane.b32.xlu0 %v627_v14, %s3256_s6 }
 0x2a1   : > { %v1523_v13 = vpop.permute.xlu1 %1522 }
 0x2a2   : > { %1592 = vst.msk [vmem:[#allocation2 + $0xa8] sm:$0xff] %vm1570_vm14, %v1523_v13  ;;  %v1521_v15 = vpop.permute.xlu0 %1520  ;;  %v3228_v13 = vld [vmem:[%s3310_s25 + $0x98] sm:$0xff] }
 0x2a3   : > { %1591 = vst.msk [vmem:[#allocation2 + $0xa0] sm:$0xff] %vm1570_vm14, %v1521_v15  ;;  %1538 = vrot.lane.b32.xlu1 %v628_v11, %s3257_s11  ;;  %v3229_v15 = vld [vmem:[%s3310_s25 + $0x90] sm:$0xff] }
 0x2a4   : > { %1536 = vrot.lane.b32.xlu0 %v627_v14, %s3257_s11 }
 0x2a5   : > { %v1146_v4 = vpop.permute.xlu1 %1145 }
 0x2a6   : > { %1219 = vst.msk [vmem:[#allocation2 + $0xb8] sm:$0xff] %vm1195_vm7, %v1146_v4  ;;  %v1144_v57 = vpop.permute.xlu0 %1143 }
 0x2a7   : > { %1218 = vst.msk [vmem:[#allocation2 + $0xb0] sm:$0xff] %vm1195_vm7, %v1144_v57  ;;  %782 = vrot.lane.b32.xlu1 %v3803_v34, %s3252_s27 }
 0x2a8   : > { %780 = vrot.lane.b32.xlu0 %v3811_v36, %s3252_s27 }
 0x2a9   : > { %v1644_v16 = vpop.permute.xlu1 %1643 }
 0x2aa   : > { %1714 = vst.msk [vmem:[#allocation2 + $0xa7] sm:$0xff] %vm1693_vm15, %v1644_v16  ;;  %v1642_v17 = vpop.permute.xlu0 %1641  ;;  %v3230_v16 = vld [vmem:[%s3310_s25 + $0xa8] sm:$0xff] }
 0x2ab   : > { %1713 = vst.msk [vmem:[#allocation2 + $0x9f] sm:$0xfe] %vm1691_vm0, %v1642_v17  ;;  %1659 = vrot.lane.b32.xlu1 %v628_v11, %s3258_s19  ;;  %v3231_v17 = vld [vmem:[%s3310_s25 + $0xa0] sm:$0xff] }
 0x2ac   : > { %1657 = vrot.lane.b32.xlu0 %v627_v14, %s3258_s19 }
 0x2ad   : > { %v771_v0 = vpop.permute.xlu1 %770 }
 0x2ae   : > { %838 = vst.msk [vmem:[#allocation2 + $0xc8] sm:$0xff] %vm814_vm5, %v771_v0  ;;  %v769_v2 = vpop.permute.xlu0 %768 }
 0x2af   : > { %837 = vst.msk [vmem:[#allocation2 + $0xc0] sm:$0xff] %vm814_vm5, %v769_v2  ;;  %903 = vrot.lane.b32.xlu1 %v3803_v34, %s3255_s30 }
 0x2b0   : > { %901 = vrot.lane.b32.xlu0 %v3811_v36, %s3255_s30 }
 0x2b1   : > { %v1275_v19 = vpop.permute.xlu1 %1274  ;;  %v1744_v21 = vld [vmem:[#allocation2 + $0xa8] sm:$0xff] }
 0x2b2   : > { %1349 = vst.msk [vmem:[#allocation2 + $0xb7] sm:$0xff] %vm1326_vm9, %v1275_v19  ;;  %v1273_v23 = vpop.permute.xlu0 %1272  ;;  %v1743_v24 = vld [vmem:[#allocation2 + $0xa0] sm:$0xff]  ;;  %v3232_v19 = vld [vmem:[%s3310_s25 + $0xb8] sm:$0xff] }
 0x2b3   : > { %1348 = vst.msk [vmem:[#allocation2 + $0xaf] sm:$0xfe] %vm1324_vm10, %v1273_v23  ;;  %3123 = vmatprep.mubr.msk.f32.mxu1 %vm629_vm2, %v1743_v24  ;;  %1031 = vrot.lane.b32.xlu1 %v628_v11, %s3251_s26 }
 0x2b4   : > { %v3107_v25 = vpop.f32.mrf.mxu1  ;;  %1029 = vrot.lane.b32.xlu0 %v627_v14, %s3251_s26  ;;  %3124 = vmatmul.mubr.msk.f32.gmra.mxu1 %vm629_vm2, %v1744_v21  ;;  %v3233_v21 = vld [vmem:[%s3310_s25 + $0xb0] sm:$0xff] }
 0x2b5   : > { %v2093_v34 = vmax.f32 %v3107_v25, 0.0  ;;  %v892_v27 = vpop.permute.xlu1 %891  ;;  %v3234_v25 = vld [vmem:[%s3310_s25 + $0xc8] sm:$0xff] }
 0x2b6   : > { %v1965_v36 = vpop.f32.mrf.mxu1  ;;  %960 = vst.msk [vmem:[#allocation2 + $0xc7] sm:$0xff] %vm937_vm8, %v892_v27  ;;  %v890_v31 = vpop.permute.xlu0 %889 }
 0x2b7   : > { %2125 = vst.msk [vmem:[#allocation3 + $0x48] sm:$0xff] %vm271_vm1, %v2093_v34  ;;  %v2092_v32 = vmax.f32 %v1965_v36, 0.0  ;;  %1161 = vrot.lane.b32.xlu1 %v628_v11, %s3253_s28  ;;  %v3235_v34 = vld [vmem:[%s3310_s25 + $0xc0] sm:$0xff] }
 0x2b8   : > { %959 = vst.msk [vmem:[#allocation2 + $0xbf] sm:$0xfe] %vm935_vm11, %v890_v31  ;;  %1159 = vrot.lane.b32.xlu0 %v627_v14, %s3253_s28  ;;  %s4464_s28 = scalar_lea.vmem %s4603_s4, %s3304_s22 }
 0x2b9   : > { %2124 = vst.msk [vmem:[#allocation3 + $0x40] sm:$0xff] %vm271_vm1, %v2092_v32  ;;  %v1405_v28 = vpop.permute.xlu1 %1404 }
 0x2ba   : > { %1473 = vst.msk [vmem:[#allocation2 + $0xb9] sm:$0x7f] %vm1450_vm12, %v1405_v28  ;;  %v1403_v30 = vpop.permute.xlu0 %1402  ;;  %v3236_v28 = vld [vmem:[%s3310_s25 + $0xd8] sm:$0xff] }
 0x2bb   : > { %1472 = vst.msk [vmem:[#allocation2 + $0xb1] sm:$0xff] %vm1448_vm13, %v1403_v30  ;;  %1290 = vrot.lane.b32.xlu1 %v628_v11, %s3254_s29  ;;  %v3226_v11 = vld [vmem:[%s3310_s25 + $0x88] sm:$0xff] }
 0x2bc   : > { %1288 = vrot.lane.b32.xlu0 %v627_v14, %s3254_s29 }
 0x2bd   : > { %v1020_v33 = vpop.permute.xlu1 %1019 }
 0x2be   : > { %1092 = vst.msk [vmem:[#allocation2 + $0xc9] sm:$0x7f] %vm1067_vm4, %v1020_v33  ;;  %v1018_v35 = vpop.permute.xlu0 %1017  ;;  %v3237_v33 = vld [vmem:[%s3310_s25 + $0xd0] sm:$0xff] }
 0x2bf   : > { %1091 = vst.msk [vmem:[#allocation2 + $0xc1] sm:$0xff] %vm1065_vm6, %v1018_v35  ;;  %2150 = vrot.lane.b32.xlu1 %v3210_v37, %s3252_s27 }
 0x2c0   : > { %2148 = vrot.lane.b32.xlu0 %v3211_v38, %s3252_s27 }
 0x2c1   : > { %v1527_v20 = vpop.permute.xlu1 %1526 }
 0x2c2   : > { %1594 = vst.msk [vmem:[#allocation2 + $0xb8] sm:$0xff] %vm1570_vm14, %v1527_v20  ;;  %v1525_v22 = vpop.permute.xlu0 %1524 }
 0x2c3   : > { %1593 = vst.msk [vmem:[#allocation2 + $0xb0] sm:$0xff] %vm1570_vm14, %v1525_v22  ;;  %2154 = vrot.lane.b32.xlu1 %v3212_v39, %s3252_s27  ;;  %v3238_v39 = vld [vmem:[%s3310_s25 + $0xe8] sm:$0xff] }
 0x2c4   : > { %2152 = vrot.lane.b32.xlu0 %v3213_v40, %s3252_s27  ;;  %v3239_v40 = vld [vmem:[%s3310_s25 + $0xe0] sm:$0xff] }
 0x2c5   : > { %v1150_v41 = vpop.permute.xlu1 %1149 }
 0x2c6   : > { %1221 = vst.msk [vmem:[#allocation2 + $0xc8] sm:$0xff] %vm1195_vm7, %v1150_v41  ;;  %v1148_v42 = vpop.permute.xlu0 %1147 }
 0x2c7   : > { %1220 = vst.msk [vmem:[#allocation2 + $0xc0] sm:$0xff] %vm1195_vm7, %v1148_v42  ;;  %2158 = vrot.lane.b32.xlu1 %v3214_v43, %s3252_s27  ;;  %v3240_v43 = vld [vmem:[%s3310_s25 + $0xf8] sm:$0xff] }
 0x2c8   : > { %2156 = vrot.lane.b32.xlu0 %v3215_v44, %s3252_s27  ;;  %v3241_v44 = vld [vmem:[%s3310_s25 + $0xf0] sm:$0xff]  ;;  %s4458_s25 = scalar_lea.vmem %s4604_s5, %s3304_s22 }
 0x2c9   : > { %v1648_v45 = vpop.permute.xlu1 %1647 }
 0x2ca   : > { %1716 = vst.msk [vmem:[#allocation2 + $0xb7] sm:$0xff] %vm1693_vm15, %v1648_v45  ;;  %v1646_v46 = vpop.permute.xlu0 %1645 }
 0x2cb   : > { %1715 = vst.msk [vmem:[#allocation2 + $0xaf] sm:$0xfe] %vm1691_vm0, %v1646_v46  ;;  %2162 = vrot.lane.b32.xlu1 %v3216_v48, %s3252_s27 }
 0x2cc   : > { %2160 = vrot.lane.b32.xlu0 %v3217_v49, %s3252_s27 }
 0x2cd   : > { %v775_v50 = vpop.permute.xlu1 %774 }
 0x2ce   : > { %840 = vst.msk [vmem:[#allocation2 + $0xd8] sm:$0xff] %vm814_vm5, %v775_v50  ;;  %v773_v53 = vpop.permute.xlu0 %772 }
 0x2cf   : > { %839 = vst.msk [vmem:[#allocation2 + $0xd0] sm:$0xff] %vm814_vm5, %v773_v53  ;;  %2166 = vrot.lane.b32.xlu1 %v3218_v52, %s3252_s27 }
 0x2d0   : > { %2164 = vrot.lane.b32.xlu0 %v3219_v54, %s3252_s27 }
 0x2d1   : > { %v1279_v6 = vpop.permute.xlu1 %1278  ;;  %v1746_v55 = vld [vmem:[#allocation2 + $0xb8] sm:$0xff] }
 0x2d2   : > { %1351 = vst.msk [vmem:[#allocation2 + $0xc7] sm:$0xff] %vm1326_vm9, %v1279_v6  ;;  %v1277_v56 = vpop.permute.xlu0 %1276  ;;  %v1745_v47 = vld [vmem:[#allocation2 + $0xb0] sm:$0xff] }
 0x2d3   : > { %1350 = vst.msk [vmem:[#allocation2 + $0xbf] sm:$0xfe] %vm1324_vm10, %v1277_v56  ;;  %3126 = vmatprep.mubr.msk.f32.mxu1 %vm629_vm2, %v1745_v47  ;;  %2170 = vrot.lane.b32.xlu1 %v3220_v51, %s3252_s27 }
 0x2d4   : > { %v3110_v58 = vpop.f32.mrf.mxu1  ;;  %3127 = vmatmul.mubr.msk.f32.gmra.mxu1 %vm629_vm2, %v1746_v55  ;;  %2168 = vrot.lane.b32.xlu0 %v3221_v26, %s3252_s27 }
 0x2d5   : > { %v2095_v29 = vmax.f32 %v3110_v58, 0.0  ;;  %v896_v59 = vpop.permute.xlu1 %895 }
 0x2d6   : > { %v1975_v60 = vpop.f32.mrf.mxu1  ;;  %962 = vst.msk [vmem:[#allocation2 + $0xd7] sm:$0xff] %vm937_vm8, %v896_v59  ;;  %v894_v61 = vpop.permute.xlu0 %893 }
 0x2d7   : > { %2127 = vst.msk [vmem:[#allocation3 + $0x58] sm:$0xff] %vm271_vm1, %v2095_v29  ;;  %v2094_v62 = vmax.f32 %v1975_v60, 0.0  ;;  %2174 = vrot.lane.b32.xlu1 %v3222_v63, %s3252_s27 }
 0x2d8   : > { %961 = vst.msk [vmem:[#allocation2 + $0xcf] sm:$0xfe] %vm935_vm11, %v894_v61  ;;  %2172 = vrot.lane.b32.xlu0 %v3223_v1, %s3252_s27  ;;  %v2308_v1 = vld [vmem:[%s4602_s3] sm:$0xff] }
 0x2d9   : > { %2126 = vst.msk [vmem:[#allocation3 + $0x50] sm:$0xff] %vm271_vm1, %v2094_v62  ;;  %v1409_v3 = vpop.permute.xlu1 %1408  ;;  %3141 = vmatprep.subr.mxu0 %v2308_v1 }
 0x2da   : > { %1475 = vst.msk [vmem:[#allocation2 + $0xc9] sm:$0x7f] %vm1450_vm12, %v1409_v3  ;;  %v1407_v5 = vpop.permute.xlu0 %1406  ;;  %3142 = vmatpush3.msra.mxu0 %v2308_v1 }
 0x2db   : > { %1474 = vst.msk [vmem:[#allocation2 + $0xc1] sm:$0xff] %vm1448_vm13, %v1407_v5  ;;  %2178 = vrot.lane.b32.xlu1 %v3224_v7, %s3252_s27 }
 0x2dc   : > { %2176 = vrot.lane.b32.xlu0 %v3225_v9, %s3252_s27 }
 0x2dd   : > { %v1024_v8 = vpop.permute.xlu1 %1023 }
 0x2de   : > { %1094 = vst.msk [vmem:[#allocation2 + $0xd9] sm:$0x7f] %vm1067_vm4, %v1024_v8  ;;  %v1022_v10 = vpop.permute.xlu0 %1021 }
 0x2df   : > { %1093 = vst.msk [vmem:[#allocation2 + $0xd1] sm:$0xff] %vm1065_vm6, %v1022_v10  ;;  %2182 = vrot.lane.b32.xlu1 %v3226_v11, %s3252_s27 }
 0x2e0   : > { %2180 = vrot.lane.b32.xlu0 %v3227_v12, %s3252_s27 }
 0x2e1   : > { %v1531_v14 = vpop.permute.xlu1 %1530 }
 0x2e2   : > { %1596 = vst.msk [vmem:[#allocation2 + $0xc8] sm:$0xff] %vm1570_vm14, %v1531_v14  ;;  %v1529_v18 = vpop.permute.xlu0 %1528 }
 0x2e3   : > { %1595 = vst.msk [vmem:[#allocation2 + $0xc0] sm:$0xff] %vm1570_vm14, %v1529_v18  ;;  %2186 = vrot.lane.b32.xlu1 %v3228_v13, %s3252_s27 }
 0x2e4   : > { %2184 = vrot.lane.b32.xlu0 %v3229_v15, %s3252_s27 }
 0x2e5   : > { %v1154_v4 = vpop.permute.xlu1 %1153 }
 0x2e6   : > { %1223 = vst.msk [vmem:[#allocation2 + $0xd8] sm:$0xff] %vm1195_vm7, %v1154_v4  ;;  %v1152_v57 = vpop.permute.xlu0 %1151 }
 0x2e7   : > { %1222 = vst.msk [vmem:[#allocation2 + $0xd0] sm:$0xff] %vm1195_vm7, %v1152_v57  ;;  %2190 = vrot.lane.b32.xlu1 %v3230_v16, %s3252_s27 }
 0x2e8   : > { %2188 = vrot.lane.b32.xlu0 %v3231_v17, %s3252_s27 }
 0x2e9   : > { %v1652_v0 = vpop.permute.xlu1 %1651 }
 0x2ea   : > { %1718 = vst.msk [vmem:[#allocation2 + $0xc7] sm:$0xff] %vm1693_vm15, %v1652_v0  ;;  %v1650_v2 = vpop.permute.xlu0 %1649 }
 0x2eb   : > { %1717 = vst.msk [vmem:[#allocation2 + $0xbf] sm:$0xfe] %vm1691_vm0, %v1650_v2  ;;  %2194 = vrot.lane.b32.xlu1 %v3232_v19, %s3252_s27 }
 0x2ec   : > { %2192 = vrot.lane.b32.xlu0 %v3233_v21, %s3252_s27 }
 0x2ed   : > { %v779_v23 = vpop.permute.xlu1 %778 }
 0x2ee   : > { %842 = vst.msk [vmem:[#allocation2 + $0xe8] sm:$0xff] %vm814_vm5, %v779_v23  ;;  %v777_v24 = vpop.permute.xlu0 %776 }
 0x2ef   : > { %841 = vst.msk [vmem:[#allocation2 + $0xe0] sm:$0xff] %vm814_vm5, %v777_v24  ;;  %2198 = vrot.lane.b32.xlu1 %v3234_v25, %s3252_s27 }
 0x2f0   : > { %2196 = vrot.lane.b32.xlu0 %v3235_v34, %s3252_s27 }
 0x2f1   : > { %v1283_v27 = vpop.permute.xlu1 %1282  ;;  %v1748_v36 = vld [vmem:[#allocation2 + $0xc8] sm:$0xff] }
 0x2f2   : > { %1353 = vst.msk [vmem:[#allocation2 + $0xd7] sm:$0xff] %vm1326_vm9, %v1283_v27  ;;  %v1281_v31 = vpop.permute.xlu0 %1280  ;;  %v1747_v32 = vld [vmem:[#allocation2 + $0xc0] sm:$0xff] }
 0x2f3   : > { %1352 = vst.msk [vmem:[#allocation2 + $0xcf] sm:$0xfe] %vm1324_vm10, %v1281_v31  ;;  %3129 = vmatprep.mubr.msk.f32.mxu1 %vm629_vm2, %v1747_v32  ;;  %2202 = vrot.lane.b32.xlu1 %v3236_v28, %s3252_s27 }
 0x2f4   : > { %v3113_v30 = vpop.f32.mrf.mxu1  ;;  %3130 = vmatmul.mubr.msk.f32.gmra.mxu1 %vm629_vm2, %v1748_v36  ;;  %2200 = vrot.lane.b32.xlu0 %v3237_v33, %s3252_s27 }
 0x2f5   : > { %v2097_v35 = vmax.f32 %v3113_v30, 0.0  ;;  %v900_v37 = vpop.permute.xlu1 %899 }
 0x2f6   : > { %964 = vst.msk [vmem:[#allocation2 + $0xe7] sm:$0xff] %vm937_vm8, %v900_v37  ;;  %v1985_v38 = vpop.f32.mrf.mxu1  ;;  %v898_v20 = vpop.permute.xlu0 %897 }
 0x2f7   : > { %2129 = vst.msk [vmem:[#allocation3 + $0x68] sm:$0xff] %vm271_vm1, %v2097_v35  ;;  %v2096_v22 = vmax.f32 %v1985_v38, 0.0  ;;  %2206 = vrot.lane.b32.xlu1 %v3238_v39, %s3252_s27 }
 0x2f8   : > { %963 = vst.msk [vmem:[#allocation2 + $0xdf] sm:$0xfe] %vm935_vm11, %v898_v20  ;;  %2204 = vrot.lane.b32.xlu0 %v3239_v40, %s3252_s27 }
 0x2f9   : > { %2128 = vst.msk [vmem:[#allocation3 + $0x60] sm:$0xff] %vm271_vm1, %v2096_v22  ;;  %v1413_v41 = vpop.permute.xlu1 %1412 }
 0x2fa   : > { %1477 = vst.msk [vmem:[#allocation2 + $0xd9] sm:$0x7f] %vm1450_vm12, %v1413_v41  ;;  %v1411_v42 = vpop.permute.xlu0 %1410 }
 0x2fb   : > { %1476 = vst.msk [vmem:[#allocation2 + $0xd1] sm:$0xff] %vm1448_vm13, %v1411_v42  ;;  %2210 = vrot.lane.b32.xlu1 %v3240_v43, %s3252_s27 }
 0x2fc   : > { %2208 = vrot.lane.b32.xlu0 %v3241_v44, %s3252_s27 }
 0x2fd   : > { %v1028_v45 = vpop.permute.xlu1 %1027 }
 0x2fe   : > { %1096 = vst.msk [vmem:[#allocation2 + $0xe9] sm:$0x7f] %vm1067_vm4, %v1028_v45  ;;  %v1026_v46 = vpop.permute.xlu0 %1025 }
 0x2ff   : > { %1095 = vst.msk [vmem:[#allocation2 + $0xe1] sm:$0xff] %vm1065_vm6, %v1026_v46 }
 0x301   : > { %v1535_v48 = vpop.permute.xlu1 %1534 }
 0x302   : > { %1598 = vst.msk [vmem:[#allocation2 + $0xd8] sm:$0xff] %vm1570_vm14, %v1535_v48  ;;  %v1533_v49 = vpop.permute.xlu0 %1532 }
 0x303   : > { %1597 = vst.msk [vmem:[#allocation2 + $0xd0] sm:$0xff] %vm1570_vm14, %v1533_v49 }
 0x305   : > { %v1158_v50 = vpop.permute.xlu1 %1157 }
 0x306   : > { %1225 = vst.msk [vmem:[#allocation2 + $0xe8] sm:$0xff] %vm1195_vm7, %v1158_v50  ;;  %v1156_v53 = vpop.permute.xlu0 %1155 }
 0x307   : > { %1224 = vst.msk [vmem:[#allocation2 + $0xe0] sm:$0xff] %vm1195_vm7, %v1156_v53 }
 0x309   : > { %v1656_v52 = vpop.permute.xlu1 %1655 }
 0x30a   : > { %1720 = vst.msk [vmem:[#allocation2 + $0xd7] sm:$0xff] %vm1693_vm15, %v1656_v52  ;;  %v1654_v54 = vpop.permute.xlu0 %1653 }
 0x30b   : > { %1719 = vst.msk [vmem:[#allocation2 + $0xcf] sm:$0xfe] %vm1691_vm0, %v1654_v54 }
 0x30d   : > { %v1287_v6 = vpop.permute.xlu1 %1286 }
 0x30e   : > { %1355 = vst.msk [vmem:[#allocation2 + $0xe7] sm:$0xff] %vm1326_vm9, %v1287_v6  ;;  %v1285_v55 = vpop.permute.xlu0 %1284 }
 0x30f   : > { %1354 = vst.msk [vmem:[#allocation2 + $0xdf] sm:$0xfe] %vm1324_vm10, %v1285_v55 }
 0x311   : > { %v1417_v56 = vpop.permute.xlu1 %1416  ;;  %v1750_v47 = vld [vmem:[#allocation2 + $0xd8] sm:$0xff] }
 0x312   : > { %1479 = vst.msk [vmem:[#allocation2 + $0xe9] sm:$0x7f] %vm1450_vm12, %v1417_v56  ;;  %v1415_v51 = vpop.permute.xlu0 %1414  ;;  %v1749_v58 = vld [vmem:[#allocation2 + $0xd0] sm:$0xff] }
 0x313   : > { %1478 = vst.msk [vmem:[#allocation2 + $0xe1] sm:$0xff] %vm1448_vm13, %v1415_v51  ;;  %3132 = vmatprep.mubr.msk.f32.mxu1 %vm629_vm2, %v1749_v58 }
 0x314   : > { %v3116_v26 = vpop.f32.mrf.mxu1  ;;  %3133 = vmatmul.mubr.msk.f32.gmra.mxu1 %vm629_vm2, %v1750_v47 }
 0x315   : > { %v2099_v29 = vmax.f32 %v3116_v26, 0.0  ;;  %v1539_v59 = vpop.permute.xlu1 %1538 }
 0x316   : > { %1600 = vst.msk [vmem:[#allocation2 + $0xe8] sm:$0xff] %vm1570_vm14, %v1539_v59  ;;  %v1995_v60 = vpop.f32.mrf.mxu1  ;;  %v1537_v61 = vpop.permute.xlu0 %1536 }
 0x317   : > { %2131 = vst.msk [vmem:[#allocation3 + $0x78] sm:$0xff] %vm271_vm1, %v2099_v29  ;;  %v2098_v62 = vmax.f32 %v1995_v60, 0.0 }
 0x318   : > { %1599 = vst.msk [vmem:[#allocation2 + $0xe0] sm:$0xff] %vm1570_vm14, %v1537_v61 }
 0x319   : > { %2130 = vst.msk [vmem:[#allocation3 + $0x70] sm:$0xff] %vm271_vm1, %v2098_v62  ;;  %v783_v63 = vpop.permute.xlu1 %782 }
 0x31a   : > { %844 = vst.msk [vmem:[#allocation2 + $0xf8] sm:$0xff] %vm814_vm5, %v783_v63  ;;  %v781_v3 = vpop.permute.xlu0 %780 }
 0x31b   : > { %843 = vst.msk [vmem:[#allocation2 + $0xf0] sm:$0xff] %vm814_vm5, %v781_v3 }
 0x31d   : > { %v1660_v5 = vpop.permute.xlu1 %1659 }
 0x31e   : > { %1722 = vst.msk [vmem:[#allocation2 + $0xe7] sm:$0xff] %vm1693_vm15, %v1660_v5  ;;  %v1658_v7 = vpop.permute.xlu0 %1657 }
 0x31f   : > { %1721 = vst.msk [vmem:[#allocation2 + $0xdf] sm:$0xfe] %vm1691_vm0, %v1658_v7 }
 0x321   : > { %v904_v9 = vpop.permute.xlu1 %903 }
 0x322   : > { %966 = vst.msk [vmem:[#allocation2 + $0xf7] sm:$0xff] %vm937_vm8, %v904_v9  ;;  %v902_v8 = vpop.permute.xlu0 %901 }
 0x323   : > { %965 = vst.msk [vmem:[#allocation2 + $0xef] sm:$0xfe] %vm935_vm11, %v902_v8 }
 0x325   : > { %v1032_v10 = vpop.permute.xlu1 %1031  ;;  %v1752_v11 = vld [vmem:[#allocation2 + $0xe8] sm:$0xff] }
 0x326   : > { %1098 = vst.msk [vmem:[#allocation2 + $0xf9] sm:$0x7f] %vm1067_vm4, %v1032_v10  ;;  %v1030_v12 = vpop.permute.xlu0 %1029  ;;  %v1751_v14 = vld [vmem:[#allocation2 + $0xe0] sm:$0xff] }
 0x327   : > { %1097 = vst.msk [vmem:[#allocation2 + $0xf1] sm:$0xff] %vm1065_vm6, %v1030_v12  ;;  %3135 = vmatprep.mubr.msk.f32.mxu1 %vm629_vm2, %v1751_v14 }
 0x328   : > { %3136 = vmatmul.mubr.msk.f32.gmra.mxu1 %vm629_vm2, %v1752_v11 }
 0x329   : > { %v1162_v18 = vpop.permute.xlu1 %1161 }
 0x32a   : > { %1227 = vst.msk [vmem:[#allocation2 + $0xf8] sm:$0xff] %vm1195_vm7, %v1162_v18  ;;  %v1160_v13 = vpop.permute.xlu0 %1159 }
 0x32b   : > { %1226 = vst.msk [vmem:[#allocation2 + $0xf0] sm:$0xff] %vm1195_vm7, %v1160_v13 }
 0x32d   : > { %v1291_v15 = vpop.permute.xlu1 %1290 }
 0x32e   : > { %1357 = vst.msk [vmem:[#allocation2 + $0xf7] sm:$0xff] %vm1326_vm9, %v1291_v15  ;;  %v1289_v4 = vpop.permute.xlu0 %1288 }
 0x32f   : > { %1356 = vst.msk [vmem:[#allocation2 + $0xef] sm:$0xfe] %vm1324_vm10, %v1289_v4 }
 0x331   : > { %v2151_v23 = vpop.permute.xlu1 %2150 }
 0x332   : > { %v2149_v21 = vpop.permute.xlu0 %2148  ;;  %2245 = vst.msk [vmem:[#allocation3 + $0x8] sm:$0xff] %vm814_vm5, %v2151_v23 }
 0x333   : > { %2244 = vst.msk [vmem:[#allocation3] sm:$0xff] %vm814_vm5, %v2149_v21 }
 0x334   : > { %v3119_v57 = vpop.f32.mrf.mxu1 }
 0x335   : > { %v2101_v16 = vmax.f32 %v3119_v57, 0.0  ;;  %v1754_v17 = vld [vmem:[#allocation2 + $0xf8] sm:$0xff]  ;;  %v2155_v25 = vpop.permute.xlu1 %2154 }
 0x336   : > { %v2005_v0 = vpop.f32.mrf.mxu1  ;;  %v1753_v2 = vld [vmem:[#allocation2 + $0xf0] sm:$0xff]  ;;  %v2153_v24 = vpop.permute.xlu0 %2152  ;;  %2247 = vst.msk [vmem:[#allocation3 + $0x18] sm:$0xff] %vm814_vm5, %v2155_v25 }
 0x337   : > { %2133 = vst.msk [vmem:[#allocation3 + $0x88] sm:$0xff] %vm271_vm1, %v2101_v16  ;;  %v2100_v19 = vmax.f32 %v2005_v0, 0.0  ;;  %3138 = vmatprep.mubr.msk.f32.mxu1 %vm629_vm2, %v1753_v2 }
 0x338   : > { %3139 = vmatmul.mubr.msk.f32.gmra.mxu1 %vm629_vm2, %v1754_v17  ;;  %2246 = vst.msk [vmem:[#allocation3 + $0x10] sm:$0xff] %vm814_vm5, %v2153_v24  ;;  %vm2663_vm2 = vcmask 130048  }
 0x339   : > { %2132 = vst.msk [vmem:[#allocation3 + $0x80] sm:$0xff] %vm271_vm1, %v2100_v19  ;;  %v2159_v27 = vpop.permute.xlu1 %2158  ;;  %v2277_v31 = vld [vmem:[#allocation3 + $0x8] sm:$0xff] }
 0x33a   : > { %v2157_v34 = vpop.permute.xlu0 %2156  ;;  %v2276_v36 = vld [vmem:[#allocation3] sm:$0xff]  ;;  %2249 = vst.msk [vmem:[#allocation3 + $0x28] sm:$0xff] %vm814_vm5, %v2159_v27 }
 0x33b   : > { %2248 = vst.msk [vmem:[#allocation3 + $0x20] sm:$0xff] %vm814_vm5, %v2157_v34  ;;  %3143 = vmatprep.mubr.msk.f32.mxu0 %vm2309_vm3, %v2276_v36 }
 0x33c   : > { %3144 = vmatmul.mubr.msk.f32.vlgmr.msra.gmra.mxu0 %vm2309_vm3, %v2277_v31 }
 0x33d   : > { %v2163_v28 = vpop.permute.xlu1 %2162  ;;  %v2279_v33 = vld [vmem:[#allocation3 + $0x18] sm:$0xff] }
 0x33e   : > { %v2161_v32 = vpop.permute.xlu0 %2160  ;;  %2251 = vst.msk [vmem:[#allocation3 + $0x38] sm:$0xff] %vm814_vm5, %v2163_v28 }
 0x33f   : > { %v2278_v30 = vld [vmem:[#allocation3 + $0x10] sm:$0xff]  ;;  %2250 = vst.msk [vmem:[#allocation3 + $0x30] sm:$0xff] %vm814_vm5, %v2161_v32 }
 0x340   : > { %3146 = vmatprep.mubr.msk.f32.mxu0 %vm2309_vm3, %v2278_v30 }
 0x341   : > { %3147 = vmatmul.mubr.msk.f32.gmra.mxu0 %vm2309_vm3, %v2279_v33  ;;  %v2167_v37 = vpop.permute.xlu1 %2166  ;;  %v2281_v20 = vld [vmem:[#allocation3 + $0x28] sm:$0xff] }
 0x342   : > { %v2165_v35 = vpop.permute.xlu0 %2164  ;;  %v2280_v38 = vld [vmem:[#allocation3 + $0x20] sm:$0xff]  ;;  %2253 = vst.msk [vmem:[#allocation3 + $0x48] sm:$0xff] %vm814_vm5, %v2167_v37 }
 0x343   : > { %2252 = vst.msk [vmem:[#allocation3 + $0x40] sm:$0xff] %vm814_vm5, %v2165_v35  ;;  %3149 = vmatprep.mubr.msk.f32.mxu0 %vm2309_vm3, %v2280_v38 }
 0x345   : > { %3150 = vmatmul.mubr.msk.f32.gmra.mxu0 %vm2309_vm3, %v2281_v20  ;;  %v2171_v39 = vpop.permute.xlu1 %2170  ;;  %v2283_v42 = vld [vmem:[#allocation3 + $0x38] sm:$0xff] }
 0x346   : > { %v2169_v22 = vpop.permute.xlu0 %2168  ;;  %2255 = vst.msk [vmem:[#allocation3 + $0x58] sm:$0xff] %vm814_vm5, %v2171_v39  ;;  %v2282_v40 = vld [vmem:[#allocation3 + $0x30] sm:$0xff] }
 0x347   : > { %2254 = vst.msk [vmem:[#allocation3 + $0x50] sm:$0xff] %vm814_vm5, %v2169_v22  ;;  %3152 = vmatprep.mubr.msk.f32.mxu0 %vm2309_vm3, %v2282_v40 }
 0x349   : > { %3153 = vmatmul.mubr.msk.f32.gmra.mxu0 %vm2309_vm3, %v2283_v42  ;;  %v2175_v49 = vpop.permute.xlu1 %2174  ;;  %v2285_v50 = vld [vmem:[#allocation3 + $0x48] sm:$0xff] }
 0x34a   : > { %v2173_v46 = vpop.permute.xlu0 %2172  ;;  %v2284_v48 = vld [vmem:[#allocation3 + $0x40] sm:$0xff]  ;;  %2257 = vst.msk [vmem:[#allocation3 + $0x68] sm:$0xff] %vm814_vm5, %v2175_v49 }
 0x34b   : > { %2256 = vst.msk [vmem:[#allocation3 + $0x60] sm:$0xff] %vm814_vm5, %v2173_v46  ;;  %3155 = vmatprep.mubr.msk.f32.mxu0 %vm2309_vm3, %v2284_v48 }
 0x34d   : > { %3156 = vmatmul.mubr.msk.f32.gmra.mxu0 %vm2309_vm3, %v2285_v50  ;;  %v2287_v52 = vld [vmem:[#allocation3 + $0x58] sm:$0xff]  ;;  %v2179_v6 = vpop.permute.xlu1 %2178 }
 0x34e   : > { %v2286_v53 = vld [vmem:[#allocation3 + $0x50] sm:$0xff]  ;;  %v2177_v54 = vpop.permute.xlu0 %2176  ;;  %2259 = vst.msk [vmem:[#allocation3 + $0x78] sm:$0xff] %vm814_vm5, %v2179_v6 }
 0x34f   : > { %3158 = vmatprep.mubr.msk.f32.mxu0 %vm2309_vm3, %v2286_v53  ;;  %2258 = vst.msk [vmem:[#allocation3 + $0x70] sm:$0xff] %vm814_vm5, %v2177_v54 }
 0x351   : > { %3159 = vmatmul.mubr.msk.f32.gmra.mxu0 %vm2309_vm3, %v2287_v52  ;;  %v2183_v47 = vpop.permute.xlu1 %2182  ;;  %v2289_v51 = vld [vmem:[#allocation3 + $0x68] sm:$0xff] }
 0x352   : > { %v2181_v55 = vpop.permute.xlu0 %2180  ;;  %v2288_v56 = vld [vmem:[#allocation3 + $0x60] sm:$0xff]  ;;  %2261 = vst.msk [vmem:[#allocation3 + $0x88] sm:$0xff] %vm814_vm5, %v2183_v47 }
 0x353   : > { %2260 = vst.msk [vmem:[#allocation3 + $0x80] sm:$0xff] %vm814_vm5, %v2181_v55  ;;  %3161 = vmatprep.mubr.msk.f32.mxu0 %vm2309_vm3, %v2288_v56 }
 0x354   : > { %v3122_v41 = vpop.f32.mrf.mxu1 }
 0x355   : > { %v2103_v43 = vmax.f32 %v3122_v41, 0.0  ;;  %3162 = vmatmul.mubr.msk.f32.gmra.mxu0 %vm2309_vm3, %v2289_v51  ;;  %v2187_v29 = vpop.permute.xlu1 %2186  ;;  %v2291_v59 = vld [vmem:[#allocation3 + $0x78] sm:$0xff] }
 0x356   : > { %v2015_v44 = vpop.f32.mrf.mxu1  ;;  %v2185_v58 = vpop.permute.xlu0 %2184  ;;  %v2290_v26 = vld [vmem:[#allocation3 + $0x70] sm:$0xff] }
 0x357   : > { %2135 = vst.msk [vmem:[#allocation3 + $0x98] sm:$0xff] %vm271_vm1, %v2103_v43  ;;  %v2102_v45 = vmax.f32 %v2015_v44, 0.0  ;;  %3164 = vmatprep.mubr.msk.f32.mxu0 %vm2309_vm3, %v2290_v26 }
 0x358   : > { %2263 = vst.msk [vmem:[#allocation3 + $0x98] sm:$0xff] %vm814_vm5, %v2187_v29 }
 0x359   : > { %2134 = vst.msk [vmem:[#allocation3 + $0x90] sm:$0xff] %vm271_vm1, %v2102_v45  ;;  %3165 = vmatmul.mubr.msk.f32.gmra.mxu0 %vm2309_vm3, %v2291_v59  ;;  %v2293_v61 = vld [vmem:[#allocation3 + $0x88] sm:$0xff]  ;;  %v2191_v5 = vpop.permute.xlu1 %2190 }
 0x35a   : > { %2262 = vst.msk [vmem:[#allocation3 + $0x90] sm:$0xff] %vm814_vm5, %v2185_v58  ;;  %v2292_v60 = vld [vmem:[#allocation3 + $0x80] sm:$0xff]  ;;  %v2189_v8 = vpop.permute.xlu0 %2188 }
 0x35b   : > { %3167 = vmatprep.mubr.msk.f32.mxu0 %vm2309_vm3, %v2292_v60 }
 0x35d   : > { %3168 = vmatmul.mubr.msk.f32.gmra.mxu0 %vm2309_vm3, %v2293_v61  ;;  %v2195_v18 = vpop.permute.xlu1 %2194 }
 0x35e   : > { %v2193_v4 = vpop.permute.xlu0 %2192 }
 0x35f   : > { %v2295_v63 = vld [vmem:[#allocation3 + $0x98] sm:$0xff] }
 0x361   : > { %v2294_v62 = vld [vmem:[#allocation3 + $0x90] sm:$0xff]  ;;  %v2199_v2 = vpop.permute.xlu1 %2198 }
 0x362   : > { %3170 = vmatprep.mubr.msk.f32.mxu0 %vm2309_vm3, %v2294_v62  ;;  %v2197_v23 = vpop.permute.xlu0 %2196 }
 0x363   : > { %3171 = vmatmul.mubr.msk.f32.gmra.mxu0 %vm2309_vm3, %v2295_v63 }
 0x365   : > { %v2203_v36 = vpop.permute.xlu1 %2202 }
 0x366   : > { %v2201_v28 = vpop.permute.xlu0 %2200 }
 0x369   : > { %v2207_v38 = vpop.permute.xlu1 %2206 }
 0x36a   : > { %v2205_v39 = vpop.permute.xlu0 %2204 }
 0x36d   : > { %v2211_v44 = vpop.permute.xlu1 %2210 }
 0x36e   : > { %v2209_v48 = vpop.permute.xlu0 %2208 }
 0x374   : > { %v3125_v1 = vpop.f32.mrf.mxu1 }
 0x375   : > { %v2105_v3 = vmax.f32 %v3125_v1, 0.0 }
 0x376   : > { %v2025_v7 = vpop.f32.mrf.mxu1 }
 0x377   : > { %2137 = vst.msk [vmem:[#allocation3 + $0xa8] sm:$0xff] %vm271_vm1, %v2105_v3  ;;  %v2104_v9 = vmax.f32 %v2025_v7, 0.0 }
 0x378   : > { %2265 = vst.msk [vmem:[#allocation3 + $0xa8] sm:$0xff] %vm814_vm5, %v2191_v5 }
 0x379   : > { %2136 = vst.msk [vmem:[#allocation3 + $0xa0] sm:$0xff] %vm271_vm1, %v2104_v9 }
 0x37a   : > { %2264 = vst.msk [vmem:[#allocation3 + $0xa0] sm:$0xff] %vm814_vm5, %v2189_v8 }
 0x37f   : > { %v2297_v10 = vld [vmem:[#allocation3 + $0xa8] sm:$0xff] }
 0x381   : > { %v2296_v11 = vld [vmem:[#allocation3 + $0xa0] sm:$0xff] }
 0x382   : > { %3173 = vmatprep.mubr.msk.f32.mxu0 %vm2309_vm3, %v2296_v11 }
 0x383   : > { %3174 = vmatmul.mubr.msk.f32.gmra.mxu0 %vm2309_vm3, %v2297_v10 }
 0x394   : > { %v3128_v12 = vpop.f32.mrf.mxu1 }
 0x395   : > { %v2107_v14 = vmax.f32 %v3128_v12, 0.0 }
 0x396   : > { %v2035_v13 = vpop.f32.mrf.mxu1 }
 0x397   : > { %2139 = vst.msk [vmem:[#allocation3 + $0xb8] sm:$0xff] %vm271_vm1, %v2107_v14  ;;  %v2106_v15 = vmax.f32 %v2035_v13, 0.0 }
 0x398   : > { %2267 = vst.msk [vmem:[#allocation3 + $0xb8] sm:$0xff] %vm814_vm5, %v2195_v18 }
 0x399   : > { %2138 = vst.msk [vmem:[#allocation3 + $0xb0] sm:$0xff] %vm271_vm1, %v2106_v15 }
 0x39a   : > { %2266 = vst.msk [vmem:[#allocation3 + $0xb0] sm:$0xff] %vm814_vm5, %v2193_v4 }
 0x39f   : > { %v2299_v57 = vld [vmem:[#allocation3 + $0xb8] sm:$0xff] }
 0x3a1   : > { %v2298_v16 = vld [vmem:[#allocation3 + $0xb0] sm:$0xff] }
 0x3a2   : > { %3176 = vmatprep.mubr.msk.f32.mxu0 %vm2309_vm3, %v2298_v16 }
 0x3a3   : > { %3177 = vmatmul.mubr.msk.f32.gmra.mxu0 %vm2309_vm3, %v2299_v57 }
 0x3b4   : > { %v3131_v17 = vpop.f32.mrf.mxu1 }
 0x3b5   : > { %v2109_v0 = vmax.f32 %v3131_v17, 0.0 }
 0x3b6   : > { %v2045_v19 = vpop.f32.mrf.mxu1 }
 0x3b7   : > { %2141 = vst.msk [vmem:[#allocation3 + $0xc8] sm:$0xff] %vm271_vm1, %v2109_v0  ;;  %v2108_v21 = vmax.f32 %v2045_v19, 0.0 }
 0x3b8   : > { %2269 = vst.msk [vmem:[#allocation3 + $0xc8] sm:$0xff] %vm814_vm5, %v2199_v2 }
 0x3b9   : > { %2140 = vst.msk [vmem:[#allocation3 + $0xc0] sm:$0xff] %vm271_vm1, %v2108_v21 }
 0x3ba   : > { %2268 = vst.msk [vmem:[#allocation3 + $0xc0] sm:$0xff] %vm814_vm5, %v2197_v23 }
 0x3bf   : > { %v2301_v24 = vld [vmem:[#allocation3 + $0xc8] sm:$0xff] }
 0x3c1   : > { %v2300_v25 = vld [vmem:[#allocation3 + $0xc0] sm:$0xff] }
 0x3c2   : > { %3179 = vmatprep.mubr.msk.f32.mxu0 %vm2309_vm3, %v2300_v25 }
 0x3c3   : > { %3180 = vmatmul.mubr.msk.f32.gmra.mxu0 %vm2309_vm3, %v2301_v24 }
 0x3d4   : > { %v3134_v34 = vpop.f32.mrf.mxu1 }
 0x3d5   : > { %v2111_v27 = vmax.f32 %v3134_v34, 0.0 }
 0x3d6   : > { %v2055_v31 = vpop.f32.mrf.mxu1 }
 0x3d7   : > { %2143 = vst.msk [vmem:[#allocation3 + $0xd8] sm:$0xff] %vm271_vm1, %v2111_v27  ;;  %v2110_v32 = vmax.f32 %v2055_v31, 0.0 }
 0x3d8   : > { %2271 = vst.msk [vmem:[#allocation3 + $0xd8] sm:$0xff] %vm814_vm5, %v2203_v36 }
 0x3d9   : > { %2142 = vst.msk [vmem:[#allocation3 + $0xd0] sm:$0xff] %vm271_vm1, %v2110_v32 }
 0x3da   : > { %2270 = vst.msk [vmem:[#allocation3 + $0xd0] sm:$0xff] %vm814_vm5, %v2201_v28 }
 0x3df   : > { %v2303_v30 = vld [vmem:[#allocation3 + $0xd8] sm:$0xff] }
 0x3e1   : > { %v2302_v33 = vld [vmem:[#allocation3 + $0xd0] sm:$0xff] }
 0x3e2   : > { %3182 = vmatprep.mubr.msk.f32.mxu0 %vm2309_vm3, %v2302_v33 }
 0x3e3   : > { %3183 = vmatmul.mubr.msk.f32.gmra.mxu0 %vm2309_vm3, %v2303_v30 }
 0x3e8   : > { %v3137_v35 = vpop.f32.mrf.mxu1 }
 0x3e9   : > { %v2113_v37 = vmax.f32 %v3137_v35, 0.0 }
 0x3ea   : > { %v2065_v20 = vpop.f32.mrf.mxu1 }
 0x3eb   : > { %2145 = vst.msk [vmem:[#allocation3 + $0xe8] sm:$0xff] %vm271_vm1, %v2113_v37  ;;  %v2112_v22 = vmax.f32 %v2065_v20, 0.0 }
 0x3ec   : > { %2273 = vst.msk [vmem:[#allocation3 + $0xe8] sm:$0xff] %vm814_vm5, %v2207_v38 }
 0x3ed   : > { %2144 = vst.msk [vmem:[#allocation3 + $0xe0] sm:$0xff] %vm271_vm1, %v2112_v22 }
 0x3ee   : > { %2272 = vst.msk [vmem:[#allocation3 + $0xe0] sm:$0xff] %vm814_vm5, %v2205_v39 }
 0x3f3   : > { %v2305_v40 = vld [vmem:[#allocation3 + $0xe8] sm:$0xff] }
 0x3f5   : > { %v2304_v41 = vld [vmem:[#allocation3 + $0xe0] sm:$0xff] }
 0x3f6   : > { %3185 = vmatprep.mubr.msk.f32.mxu0 %vm2309_vm3, %v2304_v41 }
 0x3f7   : > { %3186 = vmatmul.mubr.msk.f32.gmra.mxu0 %vm2309_vm3, %v2305_v40 }
 0x3f8   : > { %v3140_v42 = vpop.f32.mrf.mxu1 }
 0x3f9   : > { %v2115_v43 = vmax.f32 %v3140_v42, 0.0 }
 0x3fa   : > { %v2075_v45 = vpop.f32.mrf.mxu1 }
 0x3fb   : > { %2147 = vst.msk [vmem:[#allocation3 + $0xf8] sm:$0xff] %vm271_vm1, %v2115_v43  ;;  %v2114_v46 = vmax.f32 %v2075_v45, 0.0 }
 0x3fc   : > { %2275 = vst.msk [vmem:[#allocation3 + $0xf8] sm:$0xff] %vm814_vm5, %v2211_v44  ;;  %v3145_v49 = vpop.f32.mrf.mxu0 }
 0x3fd   : > { %2146 = vst.msk [vmem:[#allocation3 + $0xf0] sm:$0xff] %vm271_vm1, %v2114_v46  ;;  %v2632_v53 = vmax.f32 %v3145_v49, 0.0 }
 0x3fe   : > { %2274 = vst.msk [vmem:[#allocation3 + $0xf0] sm:$0xff] %vm814_vm5, %v2209_v48  ;;  %v2472_v54 = vpop.f32.mrf.mxu0 }
 0x3ff   : > { %2697 = vst.msk [vmem:[%s4458_s25 + $0x8] sm:$0xff] %vm2663_vm2, %v3145_v49  ;;  %2665 = vst.msk [vmem:[%s4464_s28 + $0x8] sm:$0xff] %vm2663_vm2, %v2632_v53  ;;  %v2631_v6 = vmax.f32 %v2472_v54, 0.0 }
 0x400   : > { %2696 = vst.msk [vmem:[%s4458_s25] sm:$0xff] %vm2663_vm2, %v2472_v54 }
 0x401   : > { %v3148_v55 = vpop.f32.mrf.mxu0  ;;  %2664 = vst.msk [vmem:[%s4464_s28] sm:$0xff] %vm2663_vm2, %v2631_v6 }
 0x402   : > { %v2634_v56 = vmax.f32 %v3148_v55, 0.0  ;;  %2699 = vst.msk [vmem:[%s4458_s25 + $0x18] sm:$0xff] %vm2663_vm2, %v3148_v55 }
 0x403   : > { %v2307_v50 = vld [vmem:[#allocation3 + $0xf8] sm:$0xff]  ;;  %v2482_v47 = vpop.f32.mrf.mxu0 }
 0x404   : > { %2667 = vst.msk [vmem:[%s4464_s28 + $0x18] sm:$0xff] %vm2663_vm2, %v2634_v56  ;;  %v2633_v51 = vmax.f32 %v2482_v47, 0.0  ;;  %2698 = vst.msk [vmem:[%s4458_s25 + $0x10] sm:$0xff] %vm2663_vm2, %v2482_v47 }
 0x405   : > { %v2306_v52 = vld [vmem:[#allocation3 + $0xf0] sm:$0xff]  ;;  %v3151_v58 = vpop.f32.mrf.mxu0 }
 0x406   : > { %3188 = vmatprep.mubr.msk.f32.mxu0 %vm2309_vm3, %v2306_v52  ;;  %2666 = vst.msk [vmem:[%s4464_s28 + $0x10] sm:$0xff] %vm2663_vm2, %v2633_v51  ;;  %v2636_v26 = vmax.f32 %v3151_v58, 0.0  ;;  %2701 = vst.msk [vmem:[%s4458_s25 + $0x28] sm:$0xff] %vm2663_vm2, %v3151_v58 }
 0x407   : > { %3189 = vmatmul.mubr.msk.f32.gmra.mxu0 %vm2309_vm3, %v2307_v50  ;;  %v2492_v29 = vpop.f32.mrf.mxu0 }
 0x408   : > { %2669 = vst.msk [vmem:[%s4464_s28 + $0x28] sm:$0xff] %vm2663_vm2, %v2636_v26  ;;  %v2635_v59 = vmax.f32 %v2492_v29, 0.0  ;;  %2700 = vst.msk [vmem:[%s4458_s25 + $0x20] sm:$0xff] %vm2663_vm2, %v2492_v29 }
 0x409   : > { %v3154_v60 = vpop.f32.mrf.mxu0 }
 0x40a   : > { %2668 = vst.msk [vmem:[%s4464_s28 + $0x20] sm:$0xff] %vm2663_vm2, %v2635_v59  ;;  %v2638_v61 = vmax.f32 %v3154_v60, 0.0  ;;  %2703 = vst.msk [vmem:[%s4458_s25 + $0x38] sm:$0xff] %vm2663_vm2, %v3154_v60 }
 0x40b   : > { %v2502_v62 = vpop.f32.mrf.mxu0 }
 0x40c   : > { %2671 = vst.msk [vmem:[%s4464_s28 + $0x38] sm:$0xff] %vm2663_vm2, %v2638_v61  ;;  %v2637_v63 = vmax.f32 %v2502_v62, 0.0  ;;  %2702 = vst.msk [vmem:[%s4458_s25 + $0x30] sm:$0xff] %vm2663_vm2, %v2502_v62 }
 0x40d   : > { %v3157_v1 = vpop.f32.mrf.mxu0 }
 0x40e   : > { %2670 = vst.msk [vmem:[%s4464_s28 + $0x30] sm:$0xff] %vm2663_vm2, %v2637_v63  ;;  %v2640_v3 = vmax.f32 %v3157_v1, 0.0  ;;  %2705 = vst.msk [vmem:[%s4458_s25 + $0x48] sm:$0xff] %vm2663_vm2, %v3157_v1 }
 0x40f   : > { %v2512_v5 = vpop.f32.mrf.mxu0 }
 0x410   : > { %2673 = vst.msk [vmem:[%s4464_s28 + $0x48] sm:$0xff] %vm2663_vm2, %v2640_v3  ;;  %v2639_v7 = vmax.f32 %v2512_v5, 0.0  ;;  %2704 = vst.msk [vmem:[%s4458_s25 + $0x40] sm:$0xff] %vm2663_vm2, %v2512_v5 }
 0x411   : > { %v3160_v9 = vpop.f32.mrf.mxu0 }
 0x412   : > { %2672 = vst.msk [vmem:[%s4464_s28 + $0x40] sm:$0xff] %vm2663_vm2, %v2639_v7  ;;  %v2642_v8 = vmax.f32 %v3160_v9, 0.0  ;;  %2707 = vst.msk [vmem:[%s4458_s25 + $0x58] sm:$0xff] %vm2663_vm2, %v3160_v9 }
 0x413   : > { %v2522_v10 = vpop.f32.mrf.mxu0 }
 0x414   : > { %2675 = vst.msk [vmem:[%s4464_s28 + $0x58] sm:$0xff] %vm2663_vm2, %v2642_v8  ;;  %v2641_v11 = vmax.f32 %v2522_v10, 0.0  ;;  %2706 = vst.msk [vmem:[%s4458_s25 + $0x50] sm:$0xff] %vm2663_vm2, %v2522_v10 }
 0x415   : > { %v3163_v12 = vpop.f32.mrf.mxu0 }
 0x416   : > { %2674 = vst.msk [vmem:[%s4464_s28 + $0x50] sm:$0xff] %vm2663_vm2, %v2641_v11  ;;  %v2644_v14 = vmax.f32 %v3163_v12, 0.0  ;;  %2709 = vst.msk [vmem:[%s4458_s25 + $0x68] sm:$0xff] %vm2663_vm2, %v3163_v12 }
 0x417   : > { %v2532_v18 = vpop.f32.mrf.mxu0 }
 0x418   : > { %2677 = vst.msk [vmem:[%s4464_s28 + $0x68] sm:$0xff] %vm2663_vm2, %v2644_v14  ;;  %v2643_v13 = vmax.f32 %v2532_v18, 0.0  ;;  %2708 = vst.msk [vmem:[%s4458_s25 + $0x60] sm:$0xff] %vm2663_vm2, %v2532_v18 }
 0x419   : > { %v3166_v15 = vpop.f32.mrf.mxu0 }
 0x41a   : > { %2676 = vst.msk [vmem:[%s4464_s28 + $0x60] sm:$0xff] %vm2663_vm2, %v2643_v13  ;;  %v2646_v4 = vmax.f32 %v3166_v15, 0.0  ;;  %2711 = vst.msk [vmem:[%s4458_s25 + $0x78] sm:$0xff] %vm2663_vm2, %v3166_v15 }
 0x41b   : > { %v2542_v57 = vpop.f32.mrf.mxu0 }
 0x41c   : > { %2679 = vst.msk [vmem:[%s4464_s28 + $0x78] sm:$0xff] %vm2663_vm2, %v2646_v4  ;;  %v2645_v16 = vmax.f32 %v2542_v57, 0.0  ;;  %2710 = vst.msk [vmem:[%s4458_s25 + $0x70] sm:$0xff] %vm2663_vm2, %v2542_v57 }
 0x41d   : > { %v3169_v17 = vpop.f32.mrf.mxu0 }
 0x41e   : > { %2678 = vst.msk [vmem:[%s4464_s28 + $0x70] sm:$0xff] %vm2663_vm2, %v2645_v16  ;;  %v2648_v0 = vmax.f32 %v3169_v17, 0.0  ;;  %2713 = vst.msk [vmem:[%s4458_s25 + $0x88] sm:$0xff] %vm2663_vm2, %v3169_v17 }
 0x41f   : > { %v2552_v2 = vpop.f32.mrf.mxu0 }
 0x420   : > { %2681 = vst.msk [vmem:[%s4464_s28 + $0x88] sm:$0xff] %vm2663_vm2, %v2648_v0  ;;  %v2647_v19 = vmax.f32 %v2552_v2, 0.0  ;;  %2712 = vst.msk [vmem:[%s4458_s25 + $0x80] sm:$0xff] %vm2663_vm2, %v2552_v2 }
 0x422   : > { %2680 = vst.msk [vmem:[%s4464_s28 + $0x80] sm:$0xff] %vm2663_vm2, %v2647_v19 }
 0x423   : > { %v3172_v21 = vpop.f32.mrf.mxu0 }
 0x424   : > { %v2650_v23 = vmax.f32 %v3172_v21, 0.0  ;;  %2715 = vst.msk [vmem:[%s4458_s25 + $0x98] sm:$0xff] %vm2663_vm2, %v3172_v21 }
 0x425   : > { %v2562_v24 = vpop.f32.mrf.mxu0 }
 0x426   : > { %2683 = vst.msk [vmem:[%s4464_s28 + $0x98] sm:$0xff] %vm2663_vm2, %v2650_v23  ;;  %v2649_v25 = vmax.f32 %v2562_v24, 0.0  ;;  %2714 = vst.msk [vmem:[%s4458_s25 + $0x90] sm:$0xff] %vm2663_vm2, %v2562_v24 }
 0x428   : > { %2682 = vst.msk [vmem:[%s4464_s28 + $0x90] sm:$0xff] %vm2663_vm2, %v2649_v25 }
 0x443   : > { %v3175_v34 = vpop.f32.mrf.mxu0 }
 0x444   : > { %v2652_v27 = vmax.f32 %v3175_v34, 0.0  ;;  %2717 = vst.msk [vmem:[%s4458_s25 + $0xa8] sm:$0xff] %vm2663_vm2, %v3175_v34 }
 0x445   : > { %v2572_v36 = vpop.f32.mrf.mxu0 }
 0x446   : > { %2685 = vst.msk [vmem:[%s4464_s28 + $0xa8] sm:$0xff] %vm2663_vm2, %v2652_v27  ;;  %v2651_v31 = vmax.f32 %v2572_v36, 0.0  ;;  %2716 = vst.msk [vmem:[%s4458_s25 + $0xa0] sm:$0xff] %vm2663_vm2, %v2572_v36 }
 0x448   : > { %2684 = vst.msk [vmem:[%s4464_s28 + $0xa0] sm:$0xff] %vm2663_vm2, %v2651_v31 }
 0x463   : > { %v3178_v32 = vpop.f32.mrf.mxu0 }
 0x464   : > { %v2654_v28 = vmax.f32 %v3178_v32, 0.0  ;;  %2719 = vst.msk [vmem:[%s4458_s25 + $0xb8] sm:$0xff] %vm2663_vm2, %v3178_v32 }
 0x465   : > { %v2582_v30 = vpop.f32.mrf.mxu0 }
 0x466   : > { %2687 = vst.msk [vmem:[%s4464_s28 + $0xb8] sm:$0xff] %vm2663_vm2, %v2654_v28  ;;  %v2653_v33 = vmax.f32 %v2582_v30, 0.0  ;;  %2718 = vst.msk [vmem:[%s4458_s25 + $0xb0] sm:$0xff] %vm2663_vm2, %v2582_v30 }
 0x468   : > { %2686 = vst.msk [vmem:[%s4464_s28 + $0xb0] sm:$0xff] %vm2663_vm2, %v2653_v33 }
 0x483   : > { %v3181_v35 = vpop.f32.mrf.mxu0 }
 0x484   : > { %v2656_v37 = vmax.f32 %v3181_v35, 0.0  ;;  %2721 = vst.msk [vmem:[%s4458_s25 + $0xc8] sm:$0xff] %vm2663_vm2, %v3181_v35 }
 0x485   : > { %v2592_v38 = vpop.f32.mrf.mxu0 }
 0x486   : > { %2689 = vst.msk [vmem:[%s4464_s28 + $0xc8] sm:$0xff] %vm2663_vm2, %v2656_v37  ;;  %v2655_v20 = vmax.f32 %v2592_v38, 0.0  ;;  %2720 = vst.msk [vmem:[%s4458_s25 + $0xc0] sm:$0xff] %vm2663_vm2, %v2592_v38 }
 0x488   : > { %2688 = vst.msk [vmem:[%s4464_s28 + $0xc0] sm:$0xff] %vm2663_vm2, %v2655_v20 }
 0x4a3   : > { %v3184_v22 = vpop.f32.mrf.mxu0 }
 0x4a4   : > { %v2658_v39 = vmax.f32 %v3184_v22, 0.0  ;;  %2723 = vst.msk [vmem:[%s4458_s25 + $0xd8] sm:$0xff] %vm2663_vm2, %v3184_v22 }
 0x4a5   : > { %v2602_v40 = vpop.f32.mrf.mxu0 }
 0x4a6   : > { %2691 = vst.msk [vmem:[%s4464_s28 + $0xd8] sm:$0xff] %vm2663_vm2, %v2658_v39  ;;  %v2657_v41 = vmax.f32 %v2602_v40, 0.0  ;;  %2722 = vst.msk [vmem:[%s4458_s25 + $0xd0] sm:$0xff] %vm2663_vm2, %v2602_v40 }
 0x4a8   : > { %2690 = vst.msk [vmem:[%s4464_s28 + $0xd0] sm:$0xff] %vm2663_vm2, %v2657_v41 }
 0x4b7   : > { %v3187_v42 = vpop.f32.mrf.mxu0 }
 0x4b8   : > { %v2660_v43 = vmax.f32 %v3187_v42, 0.0  ;;  %2725 = vst.msk [vmem:[%s4458_s25 + $0xe8] sm:$0xff] %vm2663_vm2, %v3187_v42 }
 0x4b9   : > { %v2612_v44 = vpop.f32.mrf.mxu0 }
 0x4ba   : > { %2693 = vst.msk [vmem:[%s4464_s28 + $0xe8] sm:$0xff] %vm2663_vm2, %v2660_v43  ;;  %v2659_v45 = vmax.f32 %v2612_v44, 0.0  ;;  %2724 = vst.msk [vmem:[%s4458_s25 + $0xe0] sm:$0xff] %vm2663_vm2, %v2612_v44 }
 0x4bc   : > { %2692 = vst.msk [vmem:[%s4464_s28 + $0xe0] sm:$0xff] %vm2663_vm2, %v2659_v45 }
 0x4c7   : > { %v3190_v46 = vpop.f32.mrf.mxu0 }
 0x4c8   : > { %v2662_v48 = vmax.f32 %v3190_v46, 0.0  ;;  %2727 = vst.msk [vmem:[%s4458_s25 + $0xf8] sm:$0xff] %vm2663_vm2, %v3190_v46 }
 0x4c9   : > { %v2622_v49 = vpop.f32.mrf.mxu0 }
 0x4ca   : > { %2695 = vst.msk [vmem:[%s4464_s28 + $0xf8] sm:$0xff] %vm2663_vm2, %v2662_v48  ;;  %v2661_v50 = vmax.f32 %v2622_v49, 0.0  ;;  %2726 = vst.msk [vmem:[%s4458_s25 + $0xf0] sm:$0xff] %vm2663_vm2, %v2622_v49 }
 0x4cc   : > { %2694 = vst.msk [vmem:[%s4464_s28 + $0xf0] sm:$0xff] %vm2663_vm2, %v2661_v50 }
 0x4cd PF: > { %s16_s18 = sadd.s32 1, %s3248_s18  }
 0x4ce   : > { %p13_p4 = scmp.ge.s32.totalorder %s16_s18, 4  }
 0x4d0   :  { %15 = sbr.rel (!%p13_p4) target bundleno = 1 (0x1), region = 79 }

</bundles_post_ra>
